<compile_context>
chip_gen: v7x
topology: tpu7x:2x2x1
jax: 0.10.0
libtpu: 0.0.40
codegen_flags: <defaults>
</compile_context>

<pallas_src>
import functools

import jax
import jax.numpy as jnp
from jax.experimental import pallas as pl
from jax.experimental.pallas import tpu as pltpu

BN_EPS = 1e-5
VMEM_LIMIT = 32 * 1024 * 1024


def _round_up(x, m):
    return ((x + m - 1) // m) * m


# ---------------------------------------------------------------------------
# Pallas kernel: fused 3x3 conv + BN(shift) + ReLU, im2col done in-kernel
# ---------------------------------------------------------------------------
def _conv3x3_kernel(x_ref, w_ref, shift_ref, o_ref, *, H, W, relu):
    # x_ref:     (1, (H+3)*(W+2), Cin)  bf16, row-major flattening of the padded image
    # w_ref:     (9, Cin, bc)           bf16, BN scale pre-folded
    # shift_ref: (1, bc)                f32
    # o_ref:     (1, H*(W+2), bc)       two garbage columns per row, sliced off outside
    Wp = W + 2
    M = H * Wp
    bc = o_ref.shape[2]
    acc = jnp.zeros((M, bc), jnp.float32)
    for dy in range(3):
        for dx in range(3):
            off = dy * Wp + dx
            a = x_ref[0, off:off + M, :]
            acc = acc + jnp.dot(a, w_ref[dy * 3 + dx],
                                preferred_element_type=jnp.float32)
    out = acc + shift_ref[...]
    if relu:
        out = jnp.maximum(out, 0.0)
    o_ref[0] = out.astype(o_ref.dtype)


def conv3x3_bn_relu(x, w, gamma, beta, mean, var):
    """x: [N,H,W,Cin]; w: [3,3,Cin,Cout] (Conv2d k=3, pad=1, bias=False) + BN(eval) + ReLU."""
    # TODO(synk): training-mode BatchNorm (batch statistics) not implemented.
    N, H, W, Cin = x.shape
    Cout = w.shape[-1]
    Wp = W + 2

    scale = gamma / jnp.sqrt(var + BN_EPS)                       # f32, per out-channel
    shift = (beta - mean * scale).astype(jnp.float32).reshape(1, Cout)
    w_f = (w * scale).astype(jnp.bfloat16).reshape(9, Cin, Cout)  # BN scale folded in

    # Pad: 1 row top, 2 rows bottom (extra row keeps the last in-kernel tap slice in bounds),
    # 1 column each side.  Flatten (H+3, W+2) -> one row axis (free, contiguous reshape).
    xp = jnp.pad(x.astype(jnp.bfloat16), ((0, 0), (1, 2), (1, 1), (0, 0)))
    x_flat = xp.reshape(N, (H + 3) * Wp, Cin)

    M = H * Wp
    bc = Cout if Cout <= 256 else 256          # 256-aligned tile for the big layers
    grid = (Cout // bc, N)                     # channel tile OUTER -> big weight block reused

    out_flat = pl.pallas_call(
        functools.partial(_conv3x3_kernel, H=H, W=W, relu=True),
        out_shape=jax.ShapeDtypeStruct((N, M, Cout), jnp.bfloat16),
        grid_spec=pltpu.PrefetchScalarGridSpec(
            num_scalar_prefetch=0,
            grid=grid,
            in_specs=[
                pl.BlockSpec((1, (H + 3) * Wp, Cin), lambda j, n: (n, 0, 0)),
                pl.BlockSpec((9, Cin, bc), lambda j, n: (0, 0, j)),
                pl.BlockSpec((1, bc), lambda j, n: (0, j)),
            ],
            out_specs=pl.BlockSpec((1, M, bc), lambda j, n: (n, 0, j)),
        ),
        compiler_params=pltpu.CompilerParams(
            dimension_semantics=("parallel", "parallel"),
            vmem_limit_bytes=VMEM_LIMIT),
    )(x_flat, w_f, shift)

    # drop the 2 garbage columns per row (conv centered on padding columns)
    return out_flat.reshape(N, H, Wp, Cout)[:, :, :W, :]


# ---------------------------------------------------------------------------
# Pallas kernel: tiled matmul with fused per-column shift (+ optional ReLU)
# (used for the 1x1 OutConv and the 2x2 transposed conv)
# ---------------------------------------------------------------------------
def _mm_kernel(a_ref, b_ref, shift_ref, o_ref, acc_ref, *, relu):
    k = pl.program_id(2)

    @pl.when(k == 0)
    def _():
        acc_ref[...] = jnp.zeros_like(acc_ref)

    acc_ref[...] += jnp.dot(a_ref[...], b_ref[...],
                            preferred_element_type=jnp.float32)

    @pl.when(k == pl.num_programs(2) - 1)
    def _():
        out = acc_ref[...] + shift_ref[...]
        if relu:
            out = jnp.maximum(out, 0.0)
        o_ref[...] = out.astype(o_ref.dtype)


def fused_matmul(a, b, shift, relu=False, out_dtype=jnp.bfloat16):
    """out = maybe_relu(a @ b + shift); shift is per output column.  bf16 in, f32 acc."""
    M, K = a.shape
    K2, N = b.shape
    assert K == K2
    a = a.astype(jnp.bfloat16)
    b = b.astype(jnp.bfloat16)
    shift = shift.astype(jnp.float32).reshape(1, N)

    bm = min(256, _round_up(M, 8))
    bk = min((128, 256, 512), key=lambda c: (_round_up(K, c) - K, -c))
    bn = min((128, 256), key=lambda c: (_round_up(N, c) - N, -c))
    Mp, Kp, Np = _round_up(M, bm), _round_up(K, bk), _round_up(N, bn)

    if (Mp, Kp) != (M, K):
        a = jnp.pad(a, ((0, Mp - M), (0, Kp - K)))
    if (Kp, Np) != (K, N):
        b = jnp.pad(b, ((0, Kp - K), (0, Np - N)))
    if Np != N:
        shift = jnp.pad(shift, ((0, 0), (0, Np - N)))

    grid = (Mp // bm, Np // bn, Kp // bk)
    out = pl.pallas_call(
        functools.partial(_mm_kernel, relu=relu),
        out_shape=jax.ShapeDtypeStruct((Mp, Np), out_dtype),
        grid_spec=pltpu.PrefetchScalarGridSpec(
            num_scalar_prefetch=0,
            grid=grid,
            in_specs=[
                pl.BlockSpec((bm, bk), lambda i, j, k: (i, k)),
                pl.BlockSpec((bk, bn), lambda i, j, k: (k, j)),
                pl.BlockSpec((1, bn), lambda i, j, k: (0, j)),
            ],
            out_specs=pl.BlockSpec((bm, bn), lambda i, j, k: (i, j)),
            scratch_shapes=[pltpu.VMEM((bm, bn), jnp.float32)],
        ),
        compiler_params=pltpu.CompilerParams(
            dimension_semantics=("parallel", "parallel", "arbitrary"),
            vmem_limit_bytes=VMEM_LIMIT),
    )(a, b, shift)
    if (Mp, Np) != (M, N):
        out = out[:M, :N]
    return out


# ---------------------------------------------------------------------------
# UNet building blocks
# ---------------------------------------------------------------------------
def double_conv(x, p):
    x = conv3x3_bn_relu(x, p["w1"], **p["bn1"])
    x = conv3x3_bn_relu(x, p["w2"], **p["bn2"])
    return x


def maxpool2(x):
    N, H, W, C = x.shape
    return x.reshape(N, H // 2, 2, W // 2, 2, C).max(axis=(2, 4))


def conv_transpose2x2(x, w, bias):
    # w: [Cin, 2, 2, Co]  (same math as ConvTranspose2d(Cin, Co, k=2, stride=2))
    N, H, W, Cin = x.shape
    Co = w.shape[-1]
    b2 = w.reshape(Cin, 4 * Co)
    shift = jnp.tile(bias, 4)
    y = fused_matmul(x.reshape(N * H * W, Cin), b2, shift,
                     relu=False, out_dtype=jnp.bfloat16)
    # TODO(synk): the 2x2 pixel-shuffle below is XLA glue (one bf16 HBM round trip);
    # could be folded into the kernel via a strided/structured output BlockSpec.
    y = y.reshape(N, H, W, 2, 2, Co).transpose(0, 1, 3, 2, 4, 5)
    return y.reshape(N, 2 * H, 2 * W, Co)


def up_block(x1, x2, p):
    x1 = conv_transpose2x2(x1, p["up_w"], p["up_b"])
    dH = x2.shape[1] - x1.shape[1]
    dW = x2.shape[2] - x1.shape[2]
    x1 = jnp.pad(x1, ((0, 0), (dH // 2, dH - dH // 2),
                      (dW // 2, dW - dW // 2), (0, 0)))
    x = jnp.concatenate([x2, x1.astype(x2.dtype)], axis=-1)  # like torch.cat([x2, x1], dim=1)
    return double_conv(x, p["dc"])


def out_conv(x, w, bias):
    # 1x1 conv with bias
    N, H, W, Cin = x.shape
    Cout = w.shape[-1]
    y = fused_matmul(x.reshape(N * H * W, Cin), w, bias,
                     relu=False, out_dtype=jnp.float32)
    return y.reshape(N, H, W, Cout)


# ---------------------------------------------------------------------------
# Deterministic parameter init (matches the module's shapes; bilinear=False)
# ---------------------------------------------------------------------------
def init_params(key, n_channels, n_classes):
    keys = iter(jax.random.split(key, 64))

    def conv_w(cin, cout):
        fan_in = 9 * cin
        return jax.random.normal(next(keys), (3, 3, cin, cout),
                                 jnp.float32) * jnp.sqrt(2.0 / fan_in)

    def bn(c):
        return dict(gamma=jnp.ones((c,), jnp.float32),
                    beta=jnp.zeros((c,), jnp.float32),
                    mean=jnp.zeros((c,), jnp.float32),
                    var=jnp.ones((c,), jnp.float32))

    def dc(cin, cout):
        return dict(w1=conv_w(cin, cout), bn1=bn(cout),
                    w2=conv_w(cout, cout), bn2=bn(cout))

    def up(cin, cout):
        w = jax.random.normal(next(keys), (cin, 2, 2, cin // 2),
                              jnp.float32) * jnp.sqrt(1.0 / (4 * cin))
        return dict(up_w=w, up_b=jnp.zeros((cin // 2,), jnp.float32),
                    dc=dc(cin, cout))

    params = dict(
        inc=dc(n_channels, 64),
        down1=dc(64, 128),
        down2=dc(128, 256),
        down3=dc(256, 512),
        down4=dc(512, 1024),
        up1=up(1024, 512),
        up2=up(512, 256),
        up3=up(256, 128),
        up4=up(128, 64),
        outc=dict(
            w=jax.random.normal(next(keys), (64, n_classes),
                                jnp.float32) * jnp.sqrt(1.0 / 64),
            b=jnp.zeros((n_classes,), jnp.float32)),
    )
    return params


# ---------------------------------------------------------------------------
# Forward pass (bilinear=False path of the PyTorch module)
# ---------------------------------------------------------------------------
def unet_forward(x_nchw, params):
    x = jnp.transpose(x_nchw, (0, 2, 3, 1))          # NCHW -> NHWC
    x1 = double_conv(x, params["inc"])
    x2 = double_conv(maxpool2(x1), params["down1"])
    x3 = double_conv(maxpool2(x2), params["down2"])
    x4 = double_conv(maxpool2(x3), params["down3"])
    x5 = double_conv(maxpool2(x4), params["down4"])
    x = up_block(x5, x4, params["up1"])
    x = up_block(x, x3, params["up2"])
    x = up_block(x, x2, params["up3"])
    x = up_block(x, x1, params["up4"])
    logits = out_conv(x, params["outc"]["w"], params["outc"]["b"])
    return jnp.transpose(logits, (0, 3, 1, 2))       # NHWC -> NCHW


if __name__ == "__main__":
    n_channels, n_classes = 4, 3
    batch, spatial = 2, 16

    key = jax.random.PRNGKey(0)
    k_x, k_p = jax.random.split(key)
    x = jax.random.normal(k_x, (batch, n_channels, spatial, spatial), jnp.float32)
    params = init_params(k_p, n_channels, n_classes)

    logits = unet_forward(x, params)
    logits = jax.block_until_ready(logits)

    assert logits.shape == (batch, n_classes, spatial, spatial), logits.shape
    assert jnp.all(jnp.isfinite(logits))
    print("KERNEL_OK")
</pallas_src>

<mosaic_0001>
module attributes {stable_mosaic.version = 11 : i64} {
  func.func @_conv3x3_kernel(%arg0: i32, %arg1: i32, %arg2: memref<1x342x4xbf16, #tpu.memory_space<vmem>>, %arg3: memref<9x4x64xbf16, #tpu.memory_space<vmem>>, %arg4: memref<1x64xf32, #tpu.memory_space<vmem>>, %arg5: memref<1x288x64xbf16, #tpu.memory_space<vmem>>) attributes {dimension_semantics = [#tpu.dimension_semantics<parallel>, #tpu.dimension_semantics<parallel>], iteration_bounds = array<i64: 1, 2>, scalar_prefetch = 0 : i64, scratch_operands = 0 : i64, tpu.core_type = #tpu.core_type<tc>, window_params = [{transform_indices = @transform_0, window_bounds = array<i64: 1, 342, 4>}, {transform_indices = @transform_1, window_bounds = array<i64: 9, 4, 64>}, {transform_indices = @transform_2, window_bounds = array<i64: 1, 64>}, {transform_indices = @transform_3, window_bounds = array<i64: 1, 288, 64>}]} {
    %cst = arith.constant 0.000000e+00 : f32
    %0 = vector.broadcast %cst : f32 to vector<288x64xf32>
    %c0 = arith.constant 0 : index
    %c0_0 = arith.constant 0 : index
    %c0_1 = arith.constant 0 : index
    %1 = vector.load %arg2[%c0, %c0_0, %c0_1] : memref<1x342x4xbf16, #tpu.memory_space<vmem>>, vector<1x288x4xbf16>
    %2 = vector.shape_cast %1 : vector<1x288x4xbf16> to vector<288x4xbf16>
    %c0_2 = arith.constant 0 : index
    %c0_3 = arith.constant 0 : index
    %c0_4 = arith.constant 0 : index
    %3 = vector.load %arg3[%c0_2, %c0_3, %c0_4] : memref<9x4x64xbf16, #tpu.memory_space<vmem>>, vector<1x4x64xbf16>
    %4 = vector.shape_cast %3 : vector<1x4x64xbf16> to vector<4x64xbf16>
    %cst_5 = arith.constant dense<0.000000e+00> : vector<288x64xf32>
    %5 = tpu.matmul %2, %4, %cst_5 {dimension_numbers = #tpu.dot_dimension_numbers<[1], [0], [0], [1], [0, 0, 1, 1], [], []>} : vector<288x4xbf16>, vector<4x64xbf16>, vector<288x64xf32> -> vector<288x64xf32>
    %6 = arith.addf %0, %5 : vector<288x64xf32>
    %c0_6 = arith.constant 0 : index
    %c1 = arith.constant 1 : index
    %c0_7 = arith.constant 0 : index
    %7 = vector.load %arg2[%c0_6, %c1, %c0_7] : memref<1x342x4xbf16, #tpu.memory_space<vmem>>, vector<1x288x4xbf16>
    %8 = vector.shape_cast %7 : vector<1x288x4xbf16> to vector<288x4xbf16>
    %c1_8 = arith.constant 1 : index
    %c0_9 = arith.constant 0 : index
    %c0_10 = arith.constant 0 : index
    %9 = vector.load %arg3[%c1_8, %c0_9, %c0_10] : memref<9x4x64xbf16, #tpu.memory_space<vmem>>, vector<1x4x64xbf16>
    %10 = vector.shape_cast %9 : vector<1x4x64xbf16> to vector<4x64xbf16>
    %cst_11 = arith.constant dense<0.000000e+00> : vector<288x64xf32>
    %11 = tpu.matmul %8, %10, %cst_11 {dimension_numbers = #tpu.dot_dimension_numbers<[1], [0], [0], [1], [0, 0, 1, 1], [], []>} : vector<288x4xbf16>, vector<4x64xbf16>, vector<288x64xf32> -> vector<288x64xf32>
    %12 = arith.addf %6, %11 : vector<288x64xf32>
    %c0_12 = arith.constant 0 : index
    %c2 = arith.constant 2 : index
    %c0_13 = arith.constant 0 : index
    %13 = vector.load %arg2[%c0_12, %c2, %c0_13] : memref<1x342x4xbf16, #tpu.memory_space<vmem>>, vector<1x288x4xbf16>
    %14 = vector.shape_cast %13 : vector<1x288x4xbf16> to vector<288x4xbf16>
    %c2_14 = arith.constant 2 : index
    %c0_15 = arith.constant 0 : index
    %c0_16 = arith.constant 0 : index
    %15 = vector.load %arg3[%c2_14, %c0_15, %c0_16] : memref<9x4x64xbf16, #tpu.memory_space<vmem>>, vector<1x4x64xbf16>
    %16 = vector.shape_cast %15 : vector<1x4x64xbf16> to vector<4x64xbf16>
    %cst_17 = arith.constant dense<0.000000e+00> : vector<288x64xf32>
    %17 = tpu.matmul %14, %16, %cst_17 {dimension_numbers = #tpu.dot_dimension_numbers<[1], [0], [0], [1], [0, 0, 1, 1], [], []>} : vector<288x4xbf16>, vector<4x64xbf16>, vector<288x64xf32> -> vector<288x64xf32>
    %18 = arith.addf %12, %17 : vector<288x64xf32>
    %c0_18 = arith.constant 0 : index
    %c18 = arith.constant 18 : index
    %c0_19 = arith.constant 0 : index
    %19 = vector.load %arg2[%c0_18, %c18, %c0_19] : memref<1x342x4xbf16, #tpu.memory_space<vmem>>, vector<1x288x4xbf16>
    %20 = vector.shape_cast %19 : vector<1x288x4xbf16> to vector<288x4xbf16>
    %c3 = arith.constant 3 : index
    %c0_20 = arith.constant 0 : index
    %c0_21 = arith.constant 0 : index
    %21 = vector.load %arg3[%c3, %c0_20, %c0_21] : memref<9x4x64xbf16, #tpu.memory_space<vmem>>, vector<1x4x64xbf16>
    %22 = vector.shape_cast %21 : vector<1x4x64xbf16> to vector<4x64xbf16>
    %cst_22 = arith.constant dense<0.000000e+00> : vector<288x64xf32>
    %23 = tpu.matmul %20, %22, %cst_22 {dimension_numbers = #tpu.dot_dimension_numbers<[1], [0], [0], [1], [0, 0, 1, 1], [], []>} : vector<288x4xbf16>, vector<4x64xbf16>, vector<288x64xf32> -> vector<288x64xf32>
    %24 = arith.addf %18, %23 : vector<288x64xf32>
    %c0_23 = arith.constant 0 : index
    %c19 = arith.constant 19 : index
    %c0_24 = arith.constant 0 : index
    %25 = vector.load %arg2[%c0_23, %c19, %c0_24] : memref<1x342x4xbf16, #tpu.memory_space<vmem>>, vector<1x288x4xbf16>
    %26 = vector.shape_cast %25 : vector<1x288x4xbf16> to vector<288x4xbf16>
    %c4 = arith.constant 4 : index
    %c0_25 = arith.constant 0 : index
    %c0_26 = arith.constant 0 : index
    %27 = vector.load %arg3[%c4, %c0_25, %c0_26] : memref<9x4x64xbf16, #tpu.memory_space<vmem>>, vector<1x4x64xbf16>
    %28 = vector.shape_cast %27 : vector<1x4x64xbf16> to vector<4x64xbf16>
    %cst_27 = arith.constant dense<0.000000e+00> : vector<288x64xf32>
    %29 = tpu.matmul %26, %28, %cst_27 {dimension_numbers = #tpu.dot_dimension_numbers<[1], [0], [0], [1], [0, 0, 1, 1], [], []>} : vector<288x4xbf16>, vector<4x64xbf16>, vector<288x64xf32> -> vector<288x64xf32>
    %30 = arith.addf %24, %29 : vector<288x64xf32>
    %c0_28 = arith.constant 0 : index
    %c20 = arith.constant 20 : index
    %c0_29 = arith.constant 0 : index
    %31 = vector.load %arg2[%c0_28, %c20, %c0_29] : memref<1x342x4xbf16, #tpu.memory_space<vmem>>, vector<1x288x4xbf16>
    %32 = vector.shape_cast %31 : vector<1x288x4xbf16> to vector<288x4xbf16>
    %c5 = arith.constant 5 : index
    %c0_30 = arith.constant 0 : index
    %c0_31 = arith.constant 0 : index
    %33 = vector.load %arg3[%c5, %c0_30, %c0_31] : memref<9x4x64xbf16, #tpu.memory_space<vmem>>, vector<1x4x64xbf16>
    %34 = vector.shape_cast %33 : vector<1x4x64xbf16> to vector<4x64xbf16>
    %cst_32 = arith.constant dense<0.000000e+00> : vector<288x64xf32>
    %35 = tpu.matmul %32, %34, %cst_32 {dimension_numbers = #tpu.dot_dimension_numbers<[1], [0], [0], [1], [0, 0, 1, 1], [], []>} : vector<288x4xbf16>, vector<4x64xbf16>, vector<288x64xf32> -> vector<288x64xf32>
    %36 = arith.addf %30, %35 : vector<288x64xf32>
    %c0_33 = arith.constant 0 : index
    %c36 = arith.constant 36 : index
    %c0_34 = arith.constant 0 : index
    %37 = vector.load %arg2[%c0_33, %c36, %c0_34] : memref<1x342x4xbf16, #tpu.memory_space<vmem>>, vector<1x288x4xbf16>
    %38 = vector.shape_cast %37 : vector<1x288x4xbf16> to vector<288x4xbf16>
    %c6 = arith.constant 6 : index
    %c0_35 = arith.constant 0 : index
    %c0_36 = arith.constant 0 : index
    %39 = vector.load %arg3[%c6, %c0_35, %c0_36] : memref<9x4x64xbf16, #tpu.memory_space<vmem>>, vector<1x4x64xbf16>
    %40 = vector.shape_cast %39 : vector<1x4x64xbf16> to vector<4x64xbf16>
    %cst_37 = arith.constant dense<0.000000e+00> : vector<288x64xf32>
    %41 = tpu.matmul %38, %40, %cst_37 {dimension_numbers = #tpu.dot_dimension_numbers<[1], [0], [0], [1], [0, 0, 1, 1], [], []>} : vector<288x4xbf16>, vector<4x64xbf16>, vector<288x64xf32> -> vector<288x64xf32>
    %42 = arith.addf %36, %41 : vector<288x64xf32>
    %c0_38 = arith.constant 0 : index
    %c37 = arith.constant 37 : index
    %c0_39 = arith.constant 0 : index
    %43 = vector.load %arg2[%c0_38, %c37, %c0_39] : memref<1x342x4xbf16, #tpu.memory_space<vmem>>, vector<1x288x4xbf16>
    %44 = vector.shape_cast %43 : vector<1x288x4xbf16> to vector<288x4xbf16>
    %c7 = arith.constant 7 : index
    %c0_40 = arith.constant 0 : index
    %c0_41 = arith.constant 0 : index
    %45 = vector.load %arg3[%c7, %c0_40, %c0_41] : memref<9x4x64xbf16, #tpu.memory_space<vmem>>, vector<1x4x64xbf16>
    %46 = vector.shape_cast %45 : vector<1x4x64xbf16> to vector<4x64xbf16>
    %cst_42 = arith.constant dense<0.000000e+00> : vector<288x64xf32>
    %47 = tpu.matmul %44, %46, %cst_42 {dimension_numbers = #tpu.dot_dimension_numbers<[1], [0], [0], [1], [0, 0, 1, 1], [], []>} : vector<288x4xbf16>, vector<4x64xbf16>, vector<288x64xf32> -> vector<288x64xf32>
    %48 = arith.addf %42, %47 : vector<288x64xf32>
    %c0_43 = arith.constant 0 : index
    %c38 = arith.constant 38 : index
    %c0_44 = arith.constant 0 : index
    %49 = vector.load %arg2[%c0_43, %c38, %c0_44] : memref<1x342x4xbf16, #tpu.memory_space<vmem>>, vector<1x288x4xbf16>
    %50 = vector.shape_cast %49 : vector<1x288x4xbf16> to vector<288x4xbf16>
    %c8 = arith.constant 8 : index
    %c0_45 = arith.constant 0 : index
    %c0_46 = arith.constant 0 : index
    %51 = vector.load %arg3[%c8, %c0_45, %c0_46] : memref<9x4x64xbf16, #tpu.memory_space<vmem>>, vector<1x4x64xbf16>
    %52 = vector.shape_cast %51 : vector<1x4x64xbf16> to vector<4x64xbf16>
    %cst_47 = arith.constant dense<0.000000e+00> : vector<288x64xf32>
    %53 = tpu.matmul %50, %52, %cst_47 {dimension_numbers = #tpu.dot_dimension_numbers<[1], [0], [0], [1], [0, 0, 1, 1], [], []>} : vector<288x4xbf16>, vector<4x64xbf16>, vector<288x64xf32> -> vector<288x64xf32>
    %54 = arith.addf %48, %53 : vector<288x64xf32>
    %c0_48 = arith.constant 0 : index
    %c0_49 = arith.constant 0 : index
    %55 = vector.load %arg4[%c0_48, %c0_49] : memref<1x64xf32, #tpu.memory_space<vmem>>, vector<1x64xf32>
    %56 = vector.broadcast %55 : vector<1x64xf32> to vector<288x64xf32>
    %57 = arith.addf %54, %56 : vector<288x64xf32>
    %cst_50 = arith.constant 0.000000e+00 : f32
    %58 = vector.broadcast %cst_50 : f32 to vector<288x64xf32>
    %59 = arith.maximumf %57, %58 : vector<288x64xf32>
    %60 = arith.truncf %59 : vector<288x64xf32> to vector<288x64xbf16>
    %c0_51 = arith.constant 0 : index
    %c0_52 = arith.constant 0 : index
    %c0_53 = arith.constant 0 : index
    %61 = vector.load %arg5[%c0_51, %c0_52, %c0_53] : memref<1x288x64xbf16, #tpu.memory_space<vmem>>, vector<1x288x64xbf16>
    %62 = vector.shape_cast %61 : vector<1x288x64xbf16> to vector<288x64xbf16>
    %63 = vector.shape_cast %60 : vector<288x64xbf16> to vector<1x288x64xbf16>
    tpu.vector_store %arg5[%c0_51, %c0_52, %c0_53], %63 {strides = array<i32>} : memref<1x288x64xbf16, #tpu.memory_space<vmem>>, vector<1x288x64xbf16>,
    return
  }
  func.func @transform_0(%arg0: i32, %arg1: i32) -> (i32, i32, i32) {
    %c0_i32 = arith.constant 0 : i32
    %c0_i32_0 = arith.constant 0 : i32
    %c0_i32_1 = arith.constant 0 : i32
    return %arg1, %c0_i32, %c0_i32_0 : i32, i32, i32
  }
  func.func @transform_1(%arg0: i32, %arg1: i32) -> (i32, i32, i32) {
    %c0_i32 = arith.constant 0 : i32
    %c0_i32_0 = arith.constant 0 : i32
    %c0_i32_1 = arith.constant 0 : i32
    return %c0_i32, %c0_i32_0, %arg0 : i32, i32, i32
  }
  func.func @transform_2(%arg0: i32, %arg1: i32) -> (i32, i32) {
    %c0_i32 = arith.constant 0 : i32
    %c0_i32_0 = arith.constant 0 : i32
    return %c0_i32, %arg0 : i32, i32
  }
  func.func @transform_3(%arg0: i32, %arg1: i32) -> (i32, i32, i32) {
    %c0_i32 = arith.constant 0 : i32
    %c0_i32_0 = arith.constant 0 : i32
    return %arg1, %c0_i32, %arg0 : i32, i32, i32
  }
}

</mosaic_0001>

<bundles_post_ra>
// kernel: tpu_custom_call.1
= control target key start
LH: loop header
LB: loop body
LE: loop exit
PB: predicated region body
PF: predicated region fallthrough
CT: control target
= control target key end

     0   :  { %s5308_s12 = smov 0   ;;  %s5310_s13 = smov 0   ;;  %s6293_s0 = inlined_call_operand.vmem [shape: bf16[2,342,4], index: 0, kind: input, shape index: {}]   ;;  %s6294_s1 = inlined_call_operand.vmem [shape: bf16[9,4,64], index: 1, kind: input, shape index: {}]   ;;  %s6295_s2 = inlined_call_operand.vmem [shape: f32[1,64], index: 2, kind: input, shape index: {}]   ;;  %s6296_s3 = inlined_call_operand.vmem [shape: bf16[2,288,64], index: 3, kind: output, shape index: {}]  }
   0x1   :  { %s5312_s14 = smov 0  }
   0x2 LB: > { %s22_s15 = sadd.s32 1, %s5282_s13  ;;  %p4042_p0 = scmp.ge.s32.totalorder %s5286_s14, 1  ;;  %s5286_s14 = sphi %s5312_s14, %s13_s14   ;;  %s5282_s13 = sphi %s5310_s13, %s6298_s13   ;;  %s5278_s12 = sphi %s5308_s12, %s6297_s12  }
   0x3   : > { %p23_p1 = scmp.ge.s32.totalorder %s22_s15, 2  ;;  %p168_p2 = scmp.lt.s32.totalorder %s5286_s14, 3 }
   0x5   : > { %s6300_s15 = smov (%p23_p1, %s22_s15), 0  ;;  %p169_p3 = pnand %p4042_p0, %p168_p2 }
   0x6   : > { %vm560_vm0 = vcmask (!%p169_p3), 1041408   ;;  %v4159_v0 = vld [vmem:[%s6294_s1 + $0x8] sm:$0x3] (!%p169_p3)  ;;  %v4045_v1 = vld [vmem:[%s6294_s1 + $0x2] sm:$0x3] (!%p169_p3)  ;;  %p202_p4 = scmp.lt.s32.totalorder (!%p169_p3), %s5278_s12, 1 }
   0x7   : > { %172 = sbr.rel (%p169_p3) target bundleno = 576 (0x240), region = 32  ;;  %5159 = vmatprep.subr.msk.bf16.mxu0 (!%p169_p3), %vm560_vm0, %v4159_v0  ;;  %5155 = vmatprep.subr.msk.bf16.mxu1 (!%p169_p3), %vm560_vm0, %v4045_v1  ;;  %v5335_v2 = vsel (!%p169_p3), %vm560_vm0, %v4159_v0, 0  ;;  %v562_v3 = vsel (!%p169_p3), %vm560_vm0, %v4045_v1, 0  ;;  %v4179_v4 = vld [vmem:[%s6294_s1 + $0xa] sm:$0x3] (!%p169_p3)  ;;  %vm505_vm2 = vcmask (!%p169_p3), 31744  }
   0x8   : > { %4676 = vmatpush3.bf16.msra.mxu0 (!%p169_p3), %v5335_v2  ;;  %4524 = vmatpush3.bf16.msra.mxu1 (!%p169_p3), %v562_v3  ;;  %v259_v5 = vld [vmem:[%s6294_s1] sm:$0x3] (!%p169_p3)  ;;  %vm356_vm1 = vsmask.f32 (!%p169_p3), 7424  ;;  %v5356_v6 = vsel (!%p169_p3), %vm560_vm0, %v4179_v4, 0  ;;  %vm2163_vm4 = vcmask (!%p169_p3), 1045504  }
   0x9   : > { %5161 = vmatprep.subr.msk.bf16.mxu0 (!%p169_p3), %vm560_vm0, %v4179_v4  ;;  %5156 = vmatprep.subr.msk.bf16.mxu1 (!%p169_p3), %vm560_vm0, %v259_v5  ;;  %vm1716_vm3 = vsmask.f32 (!%p169_p3), 6400  ;;  %v778_v12 = vsel (!%p169_p3), %vm560_vm0, %v259_v5, 0  ;;  %v5404_v39 = vld [vmem:[%s6294_s1 + $0x4] sm:$0x3] (!%p169_p3)  ;;  %vm963_vm5 = vcmask (!%p169_p3), 1046528  }
   0xa   : > { %v5438_v1 = vld [vmem:[%s6294_s1 + $0xc] sm:$0x3] (!%p169_p3)  ;;  %vm2916_vm6 = vsmask.f32 (!%p169_p3), 5376  ;;  %vm3363_vm7 = vcmask (!%p169_p3), 1044480   ;;  %vm3894_vm8 = vcmask (!%p169_p3), 519168  }
   0xe   : > { %s6302_s12 = smov (!%p202_p4, %s5278_s12), 1 }
   0xf   : > { %s5165_s24 = smul.u32 172, %s6302_s12 }
  0x10   : > { %s5166_s19 = smul.u32 144, %s6302_s12 }
  0x11   : > { %s5353_s27 = scalar_lea.vmem %s6293_s0, %s5165_s24 }
  0x12   : > { %v223_v7 = vld [vmem:[%s5353_s27] sm:$0xf]  ;;  %v5360_v8 = vld [vmem:[%s5353_s27 + $0x4] sm:$0xf]  ;;  %v5366_v10 = vld [vmem:[%s5353_s27 + $0x8] sm:$0xff]   ;;  %s6166_s22 = scalar_lea.vmem %s6296_s3, %s5166_s19 }
  0x13   : > { %v5363_v9 = vcombine.low %v223_v7, %v5360_v8  ;;  %v1271_v11 = vld [vmem:[%s5353_s27 + $0x8] sm:$0xe]  ;;  %v5371_v13 = vld [vmem:[%s5353_s27 + $0xc] sm:$0xf]  ;;  %v365_v16 = vshll.u32 %v5366_v10, 16  ;;  %v369_v17 = vshrl.u32 %v5366_v10, 16 }
  0x14   : > { %v5378_v18 = vld [vmem:[%s5353_s27 + $0x10] sm:$0xff]   ;;  %v5384_v20 = vcombine.low %v1271_v11, %v5371_v13  ;;  %v5392_v28 = vld [vmem:[%s5353_s27 + $0x18] sm:$0xff]   ;;  %v5398_v34 = vld [vmem:[%s5353_s27 + $0x20] sm:$0xff]  }
  0x15   : > { %v358_v14 = vshrl.u32 %v5363_v9, 16  ;;  %v360_v15 = vshll.u32 %v5363_v9, 16  ;;  %v5381_v19 = vld [vmem:[%s5353_s27 + $0x10] sm:$0xff]   ;;  %v367_v22 = vrot.slane %v365_v16, 1  ;;  %v1726_v23 = vshrl.u32 %v5378_v18, 16  ;;  %v5395_v33 = vld [vmem:[%s5353_s27 + $0x18] sm:$0xff]  }
  0x16   : > { %v1729_v24 = vshll.u32 %v5378_v18, 16  ;;  %v1718_v25 = vshrl.u32 %v5384_v20, 16  ;;  %v1721_v26 = vshll.u32 %v5384_v20, 16  ;;  %v373_v27 = vshll.u32 %v5381_v19, 16  ;;  %v5413_v48 = vld [vmem:[%s5353_s27 + $0x20] sm:$0xff]   ;;  %v5416_v49 = vld [vmem:[%s5353_s27 + $0x28] sm:$0xff]  }
  0x17   : > { %v362_v21 = vrot.slane %v360_v15, 1  ;;  %v371_v30 = vor.u32 %v369_v17, %v367_v22  ;;  %v1728_v31 = vrot.slane %v1726_v23, 1  ;;  %v1735_v38 = vshrl.u32 %v5392_v28, 16  ;;  %v5422_v54 = vld [vmem:[%s5353_s27 + $0x28] sm:$0xff]   ;;  %v5428_v59 = vld [vmem:[%s5353_s27 + $0x30] sm:$0xff]   ;;  %v5452_v23 = vld [vmem:[%s5353_s27 + $0x38] sm:$0xff]  }
  0x18   : > { %v1731_v32 = vrot.slane %v1729_v24, 2  ;;  %v1720_v35 = vrot.slane %v1718_v25, 1  ;;  %v1723_v36 = vrot.slane %v1721_v26, 2  ;;  %v375_v37 = vrot.slane %v373_v27, 1  ;;  %v5433_v0 = vld [vmem:[%s5353_s27 + $0x30] sm:$0xff]  }
  0x19   : > { %v363_v29 = vor.u32 %v362_v21, %v358_v14  ;;  %v1738_v42 = vshll.u32 %v5392_v28, 16  ;;  %v377_v43 = vshrl.u32 %v5381_v19, 16  ;;  %v1737_v46 = vrot.slane %v1735_v38, 1 }
  0x1a   : > { %v1732_v41 = vor.u32 %v1731_v32, %v1728_v31  ;;  %v1724_v44 = vor.u32 %v1723_v36, %v1720_v35  ;;  %v376_v45 = vsel %vm356_vm1, %v371_v30, %v375_v37  ;;  %v381_v47 = vshll.u32 %v5395_v33, 16  ;;  %v5461_v35 = vld [vmem:[%s5353_s27 + $0x38] sm:$0xff]  }
  0x1b   : > { %v368_v40 = vsel %vm356_vm1, %v363_v29, %v367_v22  ;;  %v1740_v50 = vrot.slane %v1738_v42, 2  ;;  %v379_v51 = vor.u32 %v377_v43, %v375_v37  ;;  %v1744_v52 = vshrl.u32 %v5398_v34, 16 }
  0x1c   : > { %4525 = vmatprep.mubr.msk.bf16.mxu1 %vm505_vm2, %v368_v40  ;;  %v1747_v53 = vshll.u32 %v5398_v34, 16  ;;  %v1733_v55 = vsel %vm1716_vm3, %v1724_v44, %v1732_v41  ;;  %v383_v56 = vrot.slane %v381_v47, 1  ;;  %v385_v57 = vshrl.u32 %v5395_v33, 16  ;;  %v5472_v44 = vld [vmem:[%s5353_s27 + $0x40] sm:$0xff]  }
  0x1d   : > { %4526 = vmatmul.mubr.msk.bf16.vlgmr.msra.gmra.mrb[0].mxu1 %vm505_vm2, %v376_v45  ;;  %v389_v58 = vshll.u32 %v5413_v48, 16  ;;  %4677 = vmatprep.mubr.msk.bf16.mxu0 %vm505_vm2, %v1733_v55  ;;  %v1741_v60 = vor.u32 %v1740_v50, %v1737_v46  ;;  %v1746_v61 = vrot.slane %v1744_v52, 1  ;;  %v1753_v63 = vshrl.u32 %v5416_v49, 16 }
  0x1e   : > { %4562 = vmatpush3.bf16.msra.mxu1 %v778_v12  ;;  %v1749_v62 = vrot.slane %v1747_v53, 2  ;;  %v384_v3 = vsel %vm356_vm1, %v379_v51, %v383_v56  ;;  %v387_v4 = vor.u32 %v385_v57, %v383_v56  ;;  %v1756_v7 = vshll.u32 %v5416_v49, 16  ;;  %v5477_v51 = vld [vmem:[%s5353_s27 + $0x40] sm:$0xff]  }
  0x1f   : > { %5157 = vmatprep.subr.msk.bf16.mxu1 %vm560_vm0, %v5404_v39  ;;  %v391_v5 = vrot.slane %v389_v58, 1  ;;  %v1742_v11 = vsel %vm1716_vm3, %v1732_v41, %v1741_v60  ;;  %4529 = vmatprep.mubr.msk.bf16.mxu1 %vm505_vm2, %v384_v3  ;;  %v1755_v14 = vrot.slane %v1753_v63, 1  ;;  %v393_v15 = vshrl.u32 %v5413_v48, 16  ;;  %v5488_v63 = vld [vmem:[%s5353_s27 + $0x48] sm:$0xff]  }
  0x20   : > { %v1750_v12 = vor.u32 %v1749_v62, %v1746_v61  ;;  %4678 = vmatmul.mubr.msk.bf16.vlgmr.msra.gmra.mrb[0].mxu0 %vm505_vm2, %v1742_v11  ;;  %v1758_v17 = vrot.slane %v1756_v7, 2  ;;  %v397_v21 = vshll.u32 %v5422_v54, 16  ;;  %v1762_v22 = vshrl.u32 %v5428_v59, 16  ;;  %v5485_v62 = vld [vmem:[%s5353_s27 + $0x48] sm:$0xff]  }
  0x21   : > { %v392_v16 = vsel %vm356_vm1, %v387_v4, %v391_v5  ;;  %4714 = vmatpush3.bf16.msra.mxu0 %v5356_v6  ;;  %v395_v25 = vor.u32 %v393_v15, %v391_v5  ;;  %v1765_v26 = vshll.u32 %v5428_v59, 16  ;;  %v401_v27 = vshrl.u32 %v5422_v54, 16 }
  0x22   : > { %v1751_v24 = vsel %vm1716_vm3, %v1741_v60, %v1750_v12  ;;  %v1759_v29 = vor.u32 %v1758_v17, %v1755_v14  ;;  %v399_v30 = vrot.slane %v397_v21, 1  ;;  %v1764_v31 = vrot.slane %v1762_v22, 1  ;;  %5162 = vmatprep.subr.msk.bf16.mxu0 %vm560_vm0, %v5438_v1  ;;  %v5497_v14 = vld [vmem:[%s5353_s27 + $0x50] sm:$0xff]  }
  0x23   : > { %4681 = vmatprep.mubr.msk.bf16.mxu0 %vm505_vm2, %v1751_v24  ;;  %v405_v32 = vshll.u32 %v5433_v0, 16  ;;  %v1767_v6 = vrot.slane %v1765_v26, 2  ;;  %v1771_v36 = vshrl.u32 %v5452_v23, 16  ;;  %v1774_v37 = vshll.u32 %v5452_v23, 16 }
  0x24   : > { %v409_v38 = vshrl.u32 %v5433_v0, 16  ;;  %v1760_v40 = vsel %vm1716_vm3, %v1750_v12, %v1759_v29  ;;  %v400_v41 = vsel %vm356_vm1, %v395_v25, %v399_v30  ;;  %v403_v42 = vor.u32 %v401_v27, %v399_v30  ;;  %v5505_v25 = vld [vmem:[%s5353_s27 + $0x50] sm:$0xff]  }
  0x25   : > { %4530 = vmatmul.mubr.msk.bf16.gmra.mrb[4].mxu1 %vm505_vm2, %v392_v16  ;;  %v407_v43 = vrot.slane %v405_v32, 1  ;;  %v1768_v45 = vor.u32 %v1767_v6, %v1764_v31  ;;  %v1773_v46 = vrot.slane %v1771_v36, 1  ;;  %v1776_v47 = vrot.slane %v1774_v37, 2 }
  0x26   : > { %4533 = vmatprep.mubr.msk.bf16.mxu1 %vm505_vm2, %v400_v41  ;;  %v413_v50 = vshll.u32 %v5461_v35, 16  ;;  %v1780_v55 = vshrl.u32 %v5472_v44, 16  ;;  %v1783_v56 = vshll.u32 %v5472_v44, 16  ;;  %v417_v61 = vshrl.u32 %v5461_v35, 16  ;;  %v5515_v41 = vld [vmem:[%s5353_s27 + $0x58] sm:$0xff]  }
  0x27   : > { %v408_v52 = vsel %vm356_vm1, %v403_v42, %v407_v43  ;;  %v411_v53 = vor.u32 %v409_v38, %v407_v43  ;;  %v1769_v57 = vsel %vm1716_vm3, %v1759_v29, %v1768_v45  ;;  %v1777_v58 = vor.u32 %v1776_v47, %v1773_v46  ;;  %v5510_v29 = vld [vmem:[%s5353_s27 + $0x58] sm:$0xff]  }
  0x28   : > { %v415_v60 = vrot.slane %v413_v50, 1  ;;  %4682 = vmatmul.mubr.msk.bf16.gmra.mrb[4].mxu0 %vm505_vm2, %v1760_v40  ;;  %v1782_v3 = vrot.slane %v1780_v55, 1  ;;  %v1785_v4 = vrot.slane %v1783_v56, 2  ;;  %v421_v5 = vshll.u32 %v5477_v51, 16 }
  0x29   : > { %v425_v7 = vshrl.u32 %v5477_v51, 16  ;;  %4685 = vmatprep.mubr.msk.bf16.mxu0 %vm505_vm2, %v1769_v57  ;;  %v1789_v12 = vshrl.u32 %v5485_v62, 16  ;;  %v1792_v16 = vshll.u32 %v5485_v62, 16  ;;  %v429_v17 = vshll.u32 %v5488_v63, 16  ;;  %v2157_v57 = vld [vmem:[%s5353_s27 + $0x8] sm:$0xc] }
  0x2a   : > { %v416_v11 = vsel %vm356_vm1, %v411_v53, %v415_v60  ;;  %v1786_v15 = vor.u32 %v1785_v4, %v1782_v3  ;;  %v423_v21 = vrot.slane %v421_v5, 1  ;;  %v1798_v22 = vshrl.u32 %v5497_v14, 16 }
  0x2b   : > { %v1801_v24 = vshll.u32 %v5497_v14, 16  ;;  %v1778_v26 = vsel %vm1716_vm3, %v1768_v45, %v1777_v58  ;;  %v419_v27 = vor.u32 %v417_v61, %v415_v60  ;;  %v1791_v30 = vrot.slane %v1789_v12, 1 }
  0x2c   : > { %v1794_v31 = vrot.slane %v1792_v16, 2  ;;  %v427_v32 = vor.u32 %v425_v7, %v423_v21  ;;  %v431_v6 = vrot.slane %v429_v17, 1  ;;  %v1787_v36 = vsel %vm1716_vm3, %v1777_v58, %v1786_v15  ;;  %v5529_v58 = vld [vmem:[%s5353_s27 + $0x60] sm:$0xff]  }
  0x2d   : > { %4534 = vmatmul.mubr.msk.bf16.gmra.mrb[8].mxu1 %vm505_vm2, %v408_v52  ;;  %v1800_v37 = vrot.slane %v1798_v22, 1  ;;  %v1803_v38 = vrot.slane %v1801_v24, 2  ;;  %v437_v40 = vshll.u32 %v5505_v25, 16  ;;  %v424_v42 = vsel %vm356_vm1, %v419_v27, %v423_v21 }
  0x2e   : > { %4537 = vmatprep.mubr.msk.bf16.mxu1 %vm505_vm2, %v416_v11  ;;  %v433_v43 = vshrl.u32 %v5488_v63, 16  ;;  %v1807_v45 = vshrl.u32 %v5510_v29, 16  ;;  %v1810_v46 = vshll.u32 %v5510_v29, 16  ;;  %v1795_v47 = vor.u32 %v1794_v31, %v1791_v30  ;;  %v5534_v11 = vld [vmem:[%s5353_s27 + $0x68] sm:$0xff]  }
  0x2f   : > { %v432_v50 = vsel %vm356_vm1, %v427_v32, %v431_v6  ;;  %v441_v52 = vshrl.u32 %v5505_v25, 16  ;;  %v445_v53 = vshll.u32 %v5515_v41, 16  ;;  %v1804_v55 = vor.u32 %v1803_v38, %v1800_v37  ;;  %v5551_v32 = vld [vmem:[%s5353_s27 + $0x70] sm:$0xff]  }
  0x30   : > { %4686 = vmatmul.mubr.msk.bf16.gmra.mrb[8].mxu0 %vm505_vm2, %v1778_v26  ;;  %v439_v56 = vrot.slane %v437_v40, 1  ;;  %v435_v60 = vor.u32 %v433_v43, %v431_v6  ;;  %v1809_v61 = vrot.slane %v1807_v45, 1  ;;  %v1812_v3 = vrot.slane %v1810_v46, 2  ;;  %v5557_v40 = vld [vmem:[%s5353_s27 + $0x78] sm:$0xff]  }
  0x31   : > { %4689 = vmatprep.mubr.msk.bf16.mxu0 %vm505_vm2, %v1787_v36  ;;  %v1796_v4 = vsel %vm1716_vm3, %v1786_v15, %v1795_v47  ;;  %v447_v7 = vrot.slane %v445_v53, 1  ;;  %v1805_v12 = vsel %vm1716_vm3, %v1795_v47, %v1804_v55  ;;  %v4180_v16 = vcombine.low %v2157_v57, %v5371_v13 }
  0x32   : > { %v443_v5 = vor.u32 %v441_v52, %v439_v56  ;;  %v453_v17 = vshll.u32 %v5529_v58, 16  ;;  %v440_v21 = vsel %vm356_vm1, %v435_v60, %v439_v56  ;;  %v449_v22 = vshrl.u32 %v5515_v41, 16  ;;  %v5572_v56 = vld [vmem:[%s5353_s27 + $0x80] sm:$0xff]  }
  0x33   : > { %v5543_v15 = vor.u32 %v1812_v3, %v1809_v61  ;;  %v457_v26 = vshrl.u32 %v5529_v58, 16  ;;  %v461_v27 = vshll.u32 %v5534_v11, 16  ;;  %v2164_v13 = vrot.slane %v4180_v16, 2 }
  0x34   : > { %v448_v24 = vsel %vm356_vm1, %v443_v5, %v447_v7  ;;  %v2165_v30 = vrot.slane %v5378_v18, 2  ;;  %v455_v31 = vrot.slane %v453_v17, 1  ;;  %v451_v6 = vor.u32 %v449_v22, %v447_v7 }
  0x35   : > { %4538 = vmatmul.mubr.msk.bf16.gmra.mrb[12].mxu1 %vm505_vm2, %v424_v42  ;;  %v1814_v36 = vsel %vm1716_vm3, %v1804_v55, %v5543_v15  ;;  %v463_v38 = vrot.slane %v461_v27, 1  ;;  %v469_v18 = vshll.u32 %v5551_v32, 16  ;;  %v2167_v45 = vrot.slane %v5392_v28, 2  ;;  %v5602_v27 = vld [vmem:[%s5353_s27 + $0x90] ss:$0 sps:$4 sm:$0x11]  }
  0x36   : > { %4541 = vmatprep.mubr.msk.bf16.mxu1 %vm505_vm2, %v432_v50  ;;  %v459_v37 = vor.u32 %v457_v26, %v455_v31  ;;  %v2166_v42 = vsel %vm2163_vm4, %v2164_v13, %v2165_v30  ;;  %v456_v43 = vsel %vm356_vm1, %v451_v6, %v455_v31  ;;  %v465_v46 = vshrl.u32 %v5534_v11, 16 }
  0x37   : > { %v473_v50 = vshrl.u32 %v5551_v32, 16  ;;  %v477_v52 = vshll.u32 %v5557_v40, 16  ;;  %v2169_v53 = vrot.slane %v5398_v34, 2  ;;  %v471_v55 = vrot.slane %v469_v18, 1  ;;  %v5585_v34 = vld [vmem:[%s6294_s1 + $0xe] sm:$0x3] }
  0x38   : > { %4690 = vmatmul.mubr.msk.bf16.gmra.mrb[12].mxu0 %vm505_vm2, %v1796_v4  ;;  %v464_v47 = vsel %vm356_vm1, %v459_v37, %v463_v38  ;;  %v2695_v28 = vsel %vm560_vm0, %v5438_v1, 0  ;;  %v467_v57 = vor.u32 %v465_v46, %v463_v38  ;;  %v2168_v60 = vsel %vm2163_vm4, %v2165_v30, %v2167_v45  ;;  %v5579_v4 = vld [vmem:[%s5353_s27 + $0x88] sm:$0xff]  }
  0x39   : > { %4693 = vmatprep.mubr.msk.bf16.mxu0 %vm505_vm2, %v1805_v12  ;;  %v475_v61 = vor.u32 %v473_v50, %v471_v55  ;;  %v479_v3 = vrot.slane %v477_v52, 1  ;;  %v2170_v5 = vsel %vm2163_vm4, %v2167_v45, %v2169_v53  ;;  %v485_v7 = vshll.u32 %v5572_v56, 16 }
  0x3a   : > { %v472_v1 = vsel %vm356_vm1, %v467_v57, %v471_v55  ;;  %v2171_v12 = vrot.slane %v5416_v49, 2  ;;  %v481_v16 = vshrl.u32 %v5557_v40, 16  ;;  %v493_v22 = vshll.u32 %v5579_v4, 16  ;;  %v5629_v55 = vld [vmem:[%s5353_s27 + $0x60] sm:$0xff]   ;;  %v5648_v57 = vld [vmem:[%s5353_s27 + $0x68] sm:$0xff]  }
  0x3b   : > { %v480_v17 = vsel %vm356_vm1, %v475_v61, %v479_v3  ;;  %v487_v26 = vrot.slane %v485_v7, 1  ;;  %v501_v37 = vshll.u32 %v5602_v27, 16  ;;  %v2175_v38 = vrot.slane %v5452_v23, 2  ;;  %v5666_v7 = vld [vmem:[%s5353_s27 + $0x78] sm:$0xff]  }
  0x3c   : > { %v483_v49 = vor.u32 %v481_v16, %v479_v3  ;;  %v2172_v13 = vsel %vm2163_vm4, %v2169_v53, %v2171_v12  ;;  %v495_v31 = vrot.slane %v493_v22, 1  ;;  %v2177_v18 = vrot.slane %v5472_v44, 2  ;;  %v5682_v22 = vld [vmem:[%s5353_s27 + $0x88] sm:$0xff]  }
  0x3d   : > { %4542 = vmatmul.mubr.msk.bf16.gmra.mrb[16].mxu1 %vm505_vm2, %v440_v21  ;;  %v489_v21 = vshrl.u32 %v5572_v56, 16  ;;  %v503_v45 = vrot.slane %v501_v37, 1  ;;  %v2179_v23 = vrot.slane %v5485_v62, 2  ;;  %v2181_v44 = vrot.slane %v5497_v14, 2 }
  0x3e   : > { %4545 = vmatprep.mubr.msk.bf16.mxu1 %vm505_vm2, %v448_v24  ;;  %v2173_v24 = vrot.slane %v5428_v59, 2  ;;  %v488_v59 = vsel %vm356_vm1, %v483_v49, %v487_v26  ;;  %v2183_v62 = vrot.slane %v5510_v29, 2  ;;  %v1056_v14 = vsel %vm560_vm0, %v5404_v39, 0 }
  0x3f   : > { %v491_v30 = vor.u32 %v489_v21, %v487_v26  ;;  %v2180_v52 = vsel %vm2163_vm4, %v2177_v18, %v2179_v23  ;;  %v2182_v53 = vsel %vm2163_vm4, %v2179_v23, %v2181_v44  ;;  %v2187_v61 = vrot.slane %v5648_v57, 2  ;;  %v5686_v26 = vld [vmem:[%s5353_s27 + $0x90] sm:$0xff]  }
  0x40   : > { %4694 = vmatmul.mubr.msk.bf16.gmra.mrb[16].mxu0 %vm505_vm2, %v1814_v36  ;;  %v2174_v6 = vsel %vm2163_vm4, %v2171_v12, %v2173_v24  ;;  %v497_v36 = vshrl.u32 %v5579_v4, 16  ;;  %v2176_v46 = vsel %vm2163_vm4, %v2173_v24, %v2175_v38  ;;  %v2184_v29 = vsel %vm2163_vm4, %v2181_v44, %v2183_v62  ;;  %v5670_v12 = vld [vmem:[%s5353_s27 + $0x80] sm:$0xff]  }
  0x41   : > { %4715 = vmatprep.mubr.msk.bf16.mxu0 %vm505_vm2, %v2166_v42  ;;  %v496_v42 = vsel %vm356_vm1, %v491_v30, %v495_v31  ;;  %v2191_v16 = vrot.slane %v5666_v7, 2  ;;  %v2195_v49 = vrot.slane %v5682_v22, 2  ;;  %v2471_v30 = vld [vmem:[%s5353_s27 + $0x10] sm:$0xc] }
  0x45   : > { %4546 = vmatmul.mubr.msk.bf16.gmra.mrb[20].mxu1 %vm505_vm2, %v456_v43  ;;  %v499_v43 = vor.u32 %v497_v36, %v495_v31  ;;  %v5696_v31 = vld [vmem:[%s5353_s27 + $0x14] sm:$0xf] }
  0x46   : > { %4549 = vmatprep.mubr.msk.bf16.mxu1 %vm505_vm2, %v464_v47  ;;  %v2178_v47 = vsel %vm2163_vm4, %v2175_v38, %v2177_v18  ;;  %v5706_v37 = vcombine.low %v2471_v30, %v5696_v31  ;;  %v5709_v38 = vld [vmem:[%s5353_s27 + $0x18] sm:$0xff]  }
  0x47   : > { %v504_v50 = vsel %vm356_vm1, %v499_v43, %v503_v45  ;;  %v2604_v43 = vrot.slane %v5709_v38, 2 }
  0x48   : > { %4716 = vmatmul.mubr.msk.bf16.vlgmr.msra.gmra.mrb[0].mxu0 %vm505_vm2, %v2168_v60  ;;  %v5654_v60 = vld [vmem:[%s5353_s27 + $0x70] sm:$0xff]   ;;  %v2603_v18 = vrot.slane %v5706_v37, 2 }
  0x49   : > { %4752 = vmatpush3.bf16.msra.mxu0 %v2695_v28  ;;  %4719 = vmatprep.mubr.msk.bf16.mxu0 %vm505_vm2, %v2170_v5  ;;  %v2185_v28 = vrot.slane %v5629_v55, 2  ;;  %v2189_v3 = vrot.slane %v5654_v60, 2 }
  0x4a   : > { %5163 = vmatprep.subr.msk.bf16.mxu0 %vm560_vm0, %v5585_v34 }
  0x4b   : > { %v2186_v39 = vsel %vm2163_vm4, %v2183_v62, %v2185_v28  ;;  %v2188_v5 = vsel %vm2163_vm4, %v2185_v28, %v2187_v61  ;;  %v2192_v21 = vsel %vm2163_vm4, %v2189_v3, %v2191_v16  ;;  %v3142_v62 = vsel %vm560_vm0, %v5585_v34, 0  ;;  %v5744_v28 = vld [vmem:[%s5353_s27 + $0x38] sm:$0xff]  }
  0x4d   : > { %4550 = vmatmul.mubr.msk.bf16.gmra.mrb[24].mxu1 %vm505_vm2, %v472_v1  ;;  %v2190_v1 = vsel %vm2163_vm4, %v2187_v61, %v2189_v3  ;;  %v2612_v61 = vrot.slane %v5744_v28, 2  ;;  %v5763_v3 = vld [vmem:[%s5353_s27 + $0x40] sm:$0xff]  }
  0x4e   : > { %4553 = vmatprep.mubr.msk.bf16.mxu1 %vm505_vm2, %v480_v17  ;;  %v2193_v17 = vrot.slane %v5670_v12, 2 }
  0x50   : > { %4720 = vmatmul.mubr.msk.bf16.gmra.mrb[4].mxu0 %vm505_vm2, %v2172_v13  ;;  %v2194_v24 = vsel %vm2163_vm4, %v2191_v16, %v2193_v17  ;;  %v2197_v13 = vrot.slane %v5686_v26, 2  ;;  %v957_v16 = vld [vmem:[%s5353_s27] sm:$0xe] }
  0x51   : > { %4723 = vmatprep.mubr.msk.bf16.mxu0 %vm505_vm2, %v2174_v6  ;;  %v2196_v6 = vsel %vm2163_vm4, %v2193_v17, %v2195_v49  ;;  %v2614_v17 = vrot.slane %v5763_v3, 2 }
  0x52   : > { %v2198_v36 = vsel %vm2163_vm4, %v2195_v49, %v2197_v13 }
  0x53   : > { %v2615_v49 = vsel %vm2163_vm4, %v2612_v61, %v2614_v17 }
  0x55   : > { %4554 = vmatmul.mubr.msk.bf16.gmra.mrb[28].mxu1 %vm505_vm2, %v488_v59  ;;  %v5702_v59 = vld [vmem:[%s5353_s27 + $0x98] ss:$0 sps:$4 sm:$0x33]  }
  0x56   : > { %4557 = vmatprep.mubr.msk.bf16.mxu1 %vm505_vm2, %v496_v42  ;;  %v2199_v42 = vrot.slane %v5702_v59, 2 }
  0x58   : > { %4724 = vmatmul.mubr.msk.bf16.gmra.mrb[8].mxu0 %vm505_vm2, %v2176_v46  ;;  %v2200_v45 = vsel %vm2163_vm4, %v2197_v13, %v2199_v42  ;;  %v5722_v46 = vld [vmem:[%s5353_s27 + $0x20] sm:$0xff]   ;;  %v5781_v13 = vld [vmem:[%s5353_s27 + $0x50] sm:$0xff]  }
  0x59   : > { %4727 = vmatprep.mubr.msk.bf16.mxu0 %vm505_vm2, %v2178_v47  ;;  %v2605_v47 = vsel %vm2163_vm4, %v2603_v18, %v2604_v43  ;;  %v2606_v23 = vrot.slane %v5722_v46, 2  ;;  %v2618_v42 = vrot.slane %v5781_v13, 2 }
  0x5d   : > { %4558 = vmatmul.mubr.msk.bf16.gmra.mrb[32].mxu1 %vm505_vm2, %v504_v50  ;;  %v5726_v50 = vld [vmem:[%s5353_s27 + $0x28] sm:$0xff]  }
  0x5e   : > { %4563 = vmatprep.mubr.msk.bf16.mxu1 %vm505_vm2, %v5363_v9  ;;  %v5640_v9 = vld [vmem:[%s6294_s1 + $0x6] sm:$0x3]  ;;  %v2608_v44 = vrot.slane %v5726_v50, 2 }
  0x60   : > { %4728 = vmatmul.mubr.msk.bf16.gmra.mrb[12].mxu0 %vm505_vm2, %v2180_v52  ;;  %v2607_v52 = vsel %vm2163_vm4, %v2604_v43, %v2606_v23 }
  0x61   : > { %4731 = vmatprep.mubr.msk.bf16.mxu0 %vm505_vm2, %v2182_v53  ;;  %v5738_v53 = vld [vmem:[%s5353_s27 + $0x30] sm:$0xff]  }
  0x65   : > { %4564 = vmatmul.mubr.msk.bf16.vlgmr.msra.gmra.mrb[0].mxu1 %vm505_vm2, %v5366_v10 }
  0x66   : > { %4567 = vmatprep.mubr.msk.bf16.mxu1 %vm505_vm2, %v5381_v19  ;;  %4600 = vmatpush3.bf16.msra.mxu1 %v1056_v14  ;;  %v2609_v14 = vsel %vm2163_vm4, %v2606_v23, %v2608_v44  ;;  %v969_v23 = vrot.slane %v5395_v33, 1 }
  0x67   : > { %5158 = vmatprep.subr.msk.bf16.mxu1 %vm560_vm0, %v5640_v9 }
  0x68   : > { %4732 = vmatmul.mubr.msk.bf16.gmra.mrb[16].mxu0 %vm505_vm2, %v2184_v29  ;;  %v5749_v29 = vld [vmem:[%s6294_s1 + $0x10] sm:$0x3] }
  0x69   : > { %4735 = vmatprep.mubr.msk.bf16.mxu0 %vm505_vm2, %v2186_v39  ;;  %v2610_v39 = vrot.slane %v5738_v53, 2 }
  0x6b   : > { %v2611_v34 = vsel %vm2163_vm4, %v2608_v44, %v2610_v39 }
  0x6d   : > { %4568 = vmatmul.mubr.msk.bf16.gmra.mrb[4].mxu1 %vm505_vm2, %v5395_v33 }
  0x6e   : > { %4571 = vmatprep.mubr.msk.bf16.mxu1 %vm505_vm2, %v5413_v48 }
  0x70   : > { %4736 = vmatmul.mubr.msk.bf16.gmra.mrb[20].mxu0 %vm505_vm2, %v2188_v5  ;;  %v2613_v5 = vsel %vm2163_vm4, %v2610_v39, %v2612_v61  ;;  %v1495_v39 = vsel %vm560_vm0, %v5640_v9, 0  ;;  %v971_v61 = vrot.slane %v5413_v48, 1  ;;  %v5253_v9 = vld [vmem:[%s6294_s1 + $0x8] sm:$0x3] }
  0x71   : > { %4739 = vmatprep.mubr.msk.bf16.mxu0 %vm505_vm2, %v2190_v1  ;;  %v5767_v1 = vld [vmem:[%s5353_s27 + $0x48] sm:$0xff]  }
  0x72   : > { %v972_v48 = vsel %vm963_vm5, %v969_v23, %v971_v61 }
  0x75   : > { %4572 = vmatmul.mubr.msk.bf16.gmra.mrb[8].mxu1 %vm505_vm2, %v5422_v54 }
  0x76   : > { %4575 = vmatprep.mubr.msk.bf16.mxu1 %vm505_vm2, %v5433_v0 }
  0x78   : > { %4740 = vmatmul.mubr.msk.bf16.gmra.mrb[24].mxu0 %vm505_vm2, %v2192_v21  ;;  %v4102_v21 = vcombine.low %v957_v16, %v5360_v8  ;;  %v5786_v8 = vld [vmem:[%s5353_s27 + $0x58] sm:$0xff]   ;;  %v973_v16 = vrot.slane %v5422_v54, 1 }
  0x79   : > { %4743 = vmatprep.mubr.msk.bf16.mxu0 %vm505_vm2, %v2194_v24  ;;  %v2616_v24 = vrot.slane %v5767_v1, 2  ;;  %v2620_v43 = vrot.slane %v5786_v8, 2 }
  0x7a   : > { %v964_v30 = vrot.slane %v4102_v21, 1  ;;  %v5828_v21 = vld [vmem:[%s5353_s27 + $0x78] sm:$0xff]   ;;  %v974_v54 = vsel %vm963_vm5, %v971_v61, %v973_v16 }
  0x7b   : > { %v2621_v44 = vsel %vm2163_vm4, %v2618_v42, %v2620_v43 }
  0x7d   : > { %4576 = vmatmul.mubr.msk.bf16.gmra.mrb[12].mxu1 %vm505_vm2, %v5461_v35 }
  0x7e   : > { %4579 = vmatprep.mubr.msk.bf16.mxu1 %vm505_vm2, %v5477_v51 }
  0x80   : > { %4744 = vmatmul.mubr.msk.bf16.gmra.mrb[28].mxu0 %vm505_vm2, %v2196_v6  ;;  %v965_v6 = vrot.slane %v5366_v10, 1  ;;  %v967_v10 = vrot.slane %v5381_v19, 1 }
  0x81   : > { %4747 = vmatprep.mubr.msk.bf16.mxu0 %vm505_vm2, %v2198_v36  ;;  %v2617_v36 = vsel %vm2163_vm4, %v2614_v17, %v2616_v24 }
  0x82   : > { %v966_v18 = vsel %vm963_vm5, %v964_v30, %v965_v6  ;;  %v975_v30 = vrot.slane %v5433_v0, 1 }
  0x85   : > { %4580 = vmatmul.mubr.msk.bf16.gmra.mrb[16].mxu1 %vm505_vm2, %v5488_v63 }
  0x86   : > { %4583 = vmatprep.mubr.msk.bf16.mxu1 %vm505_vm2, %v5505_v25 }
  0x88   : > { %4748 = vmatmul.mubr.msk.bf16.gmra.mrb[32].mxu0 %vm505_vm2, %v2200_v45  ;;  %v2619_v45 = vsel %vm2163_vm4, %v2616_v24, %v2618_v42  ;;  %v977_v42 = vrot.slane %v5461_v35, 1  ;;  %v979_v35 = vrot.slane %v5477_v51, 1 }
  0x89   : > { %4753 = vmatprep.mubr.msk.bf16.mxu0 %vm505_vm2, %v2605_v47  ;;  %v5799_v47 = vld [vmem:[%s5353_s27 + $0x60] sm:$0xff]  }
  0x8a   : > { %v2622_v19 = vrot.slane %v5799_v47, 2 }
  0x8d   : > { %4584 = vmatmul.mubr.msk.bf16.gmra.mrb[20].mxu1 %vm505_vm2, %v5515_v41 }
  0x8e   : > { %4587 = vmatprep.mubr.msk.bf16.mxu1 %vm505_vm2, %v5529_v58 }
  0x90   : > { %4754 = vmatmul.mubr.msk.bf16.vlgmr.msra.gmra.mrb[0].mxu0 %vm505_vm2, %v2607_v52  ;;  %v5804_v52 = vld [vmem:[%s5353_s27 + $0x68] sm:$0xff]  }
  0x91   : > { %4790 = vmatpush3.bf16.msra.mxu0 %v3142_v62  ;;  %4757 = vmatprep.mubr.msk.bf16.mxu0 %vm505_vm2, %v2609_v14  ;;  %v968_v62 = vsel %vm963_vm5, %v965_v6, %v967_v10  ;;  %v970_v14 = vsel %vm963_vm5, %v967_v10, %v969_v23  ;;  %v2624_v33 = vrot.slane %v5804_v52, 2  ;;  %v976_v10 = vsel %vm963_vm5, %v973_v16, %v975_v30 }
  0x92   : > { %5164 = vmatprep.subr.msk.bf16.mxu0 %vm560_vm0, %v5749_v29  ;;  %v2918_v16 = vshrl.u32 %v5706_v37, 16 }
  0x93   : > { %v2625_v17 = vsel %vm2163_vm4, %v2622_v19, %v2624_v33 }
  0x95   : > { %4588 = vmatmul.mubr.msk.bf16.gmra.mrb[24].mxu1 %vm505_vm2, %v5534_v11 }
  0x96   : > { %4591 = vmatprep.mubr.msk.bf16.mxu1 %vm505_vm2, %v5551_v32 }
  0x98   : > { %4758 = vmatmul.mubr.msk.bf16.gmra.mrb[4].mxu0 %vm505_vm2, %v2611_v34  ;;  %v2623_v34 = vsel %vm2163_vm4, %v2620_v43, %v2622_v19  ;;  %v5846_v43 = vld [vmem:[%s5353_s27 + $0x88] sm:$0xff]   ;;  %v981_v19 = vrot.slane %v5488_v63, 1  ;;  %v2921_v63 = vshll.u32 %v5706_v37, 16 }
  0x99   : > { %4761 = vmatprep.mubr.msk.bf16.mxu0 %vm505_vm2, %v2613_v5  ;;  %v5819_v5 = vld [vmem:[%s5353_s27 + $0x70] sm:$0xff]   ;;  %v2632_v23 = vrot.slane %v5846_v43, 2 }
  0x9a   : > { %v2626_v24 = vrot.slane %v5819_v5, 2  ;;  %v982_v51 = vsel %vm963_vm5, %v979_v35, %v981_v19 }
  0x9c   : > { %v2627_v6 = vsel %vm2163_vm4, %v2624_v33, %v2626_v24  ;;  %v980_v33 = vsel %vm963_vm5, %v977_v42, %v979_v35 }
  0x9d   : > { %4592 = vmatmul.mubr.msk.bf16.gmra.mrb[28].mxu1 %vm505_vm2, %v5557_v40 }
  0x9e   : > { %4595 = vmatprep.mubr.msk.bf16.mxu1 %vm505_vm2, %v5572_v56 }
  0xa0   : > { %4762 = vmatmul.mubr.msk.bf16.gmra.mrb[8].mxu0 %vm505_vm2, %v2615_v49  ;;  %v2628_v49 = vrot.slane %v5828_v21, 2 }
  0xa1   : > { %4765 = vmatprep.mubr.msk.bf16.mxu0 %vm505_vm2, %v2617_v36  ;;  %v5841_v36 = vld [vmem:[%s5353_s27 + $0x80] sm:$0xff]  }
  0xa2   : > { %v2630_v0 = vrot.slane %v5841_v36, 2 }
  0xa5   : > { %4596 = vmatmul.mubr.msk.bf16.gmra.mrb[32].mxu1 %vm505_vm2, %v5579_v4 }
  0xa6   : > { %4601 = vmatprep.mubr.msk.bf16.mxu1 %vm505_vm2, %v966_v18  ;;  %v2629_v18 = vsel %vm2163_vm4, %v2626_v24, %v2628_v49 }
  0xa8   : > { %4766 = vmatmul.mubr.msk.bf16.gmra.mrb[12].mxu0 %vm505_vm2, %v2619_v45  ;;  %v978_v45 = vsel %vm963_vm5, %v975_v30, %v977_v42  ;;  %v985_v30 = vrot.slane %v5515_v41, 1  ;;  %v2923_v42 = vrot.slane %v2921_v63, 3  ;;  %v2944_v41 = vshrl.u32 %v5726_v50, 16 }
  0xa9   : > { %4769 = vmatprep.mubr.msk.bf16.mxu0 %vm505_vm2, %v2621_v44  ;;  %v2631_v44 = vsel %vm2163_vm4, %v2628_v49, %v2630_v0  ;;  %v5249_v49 = vld [vmem:[%s5353_s27 + $0xa0] ss:$0 sps:$4 sm:$0x33]  }
  0xad   : > { %4602 = vmatmul.mubr.msk.bf16.vlgmr.msra.gmra.mrb[0].mxu1 %vm505_vm2, %v968_v62  ;;  %v5859_v62 = vld [vmem:[%s5353_s27 + $0x90] sm:$0xff]  }
  0xae   : > { %4605 = vmatprep.mubr.msk.bf16.mxu1 %vm505_vm2, %v970_v14  ;;  %4638 = vmatpush3.bf16.msra.mxu1 %v1495_v39  ;;  %v5863_v14 = vld [vmem:[%s5353_s27 + $0x98] sm:$0xff]   ;;  %v2633_v39 = vsel %vm2163_vm4, %v2630_v0, %v2632_v23  ;;  %v2634_v61 = vrot.slane %v5859_v62, 2  ;;  %v2638_v0 = vrot.slane %v5249_v49, 2 }
  0xaf   : > { %5160 = vmatprep.subr.msk.bf16.mxu1 %vm560_vm0, %v5253_v9  ;;  %v2926_v9 = vshrl.u32 %v5709_v38, 16 }
  0xb0   : > { %4770 = vmatmul.mubr.msk.bf16.gmra.mrb[16].mxu0 %vm505_vm2, %v2623_v34  ;;  %v2636_v34 = vrot.slane %v5863_v14, 2  ;;  %v2635_v24 = vsel %vm2163_vm4, %v2632_v23, %v2634_v61  ;;  %v2938_v23 = vshll.u32 %v5722_v46, 16 }
  0xb1   : > { %4773 = vmatprep.mubr.msk.bf16.mxu0 %vm505_vm2, %v2625_v17  ;;  %v2929_v17 = vshll.u32 %v5709_v38, 16  ;;  %v2928_v37 = vrot.slane %v2926_v9, 2  ;;  %v2946_v9 = vrot.slane %v2944_v41, 2  ;;  %v2971_v41 = vshrl.u32 %v5763_v3, 16 }
  0xb5   : > { %4606 = vmatmul.mubr.msk.bf16.gmra.mrb[4].mxu1 %vm505_vm2, %v972_v48  ;;  %v983_v48 = vrot.slane %v5505_v25, 1 }
  0xb6   : > { %4609 = vmatprep.mubr.msk.bf16.mxu1 %vm505_vm2, %v974_v54  ;;  %v2637_v54 = vsel %vm2163_vm4, %v2634_v61, %v2636_v34 }
  0xb7   : > { %v986_v25 = vsel %vm963_vm5, %v983_v48, %v985_v30 }
  0xb8   : > { %4774 = vmatmul.mubr.msk.bf16.gmra.mrb[20].mxu0 %vm505_vm2, %v2627_v6  ;;  %v2920_v6 = vrot.slane %v2918_v16, 2  ;;  %v989_v16 = vrot.slane %v5534_v11, 1  ;;  %v2962_v11 = vshrl.u32 %v5744_v28, 16 }
  0xb9   : > { %4777 = vmatprep.mubr.msk.bf16.mxu0 %vm505_vm2, %v2629_v18  ;;  %v2931_v18 = vrot.slane %v2929_v17, 3 }
  0xba   : > { %v2924_v35 = vor.u32 %v2923_v42, %v2920_v6  ;;  %v2965_v6 = vshll.u32 %v5744_v28, 16 }
  0xbd   : > { %4610 = vmatmul.mubr.msk.bf16.gmra.mrb[8].mxu1 %vm505_vm2, %v976_v10  ;;  %v984_v10 = vsel %vm963_vm5, %v981_v19, %v983_v48  ;;  %v987_v19 = vrot.slane %v5529_v58, 1  ;;  %v2953_v58 = vshrl.u32 %v5738_v53, 16 }
  0xbe   : > { %4613 = vmatprep.mubr.msk.bf16.mxu1 %vm505_vm2, %v978_v45  ;;  %v2935_v45 = vshrl.u32 %v5722_v46, 16 }
  0xbf   : > { %v988_v48 = vsel %vm963_vm5, %v985_v30, %v987_v19  ;;  %v991_v30 = vrot.slane %v5551_v32, 1  ;;  %v2974_v32 = vshll.u32 %v5763_v3, 16 }
  0xc0   : > { %4778 = vmatmul.mubr.msk.bf16.gmra.mrb[24].mxu0 %vm505_vm2, %v2631_v44  ;;  %v2932_v44 = vor.u32 %v2931_v18, %v2928_v37  ;;  %v2937_v61 = vrot.slane %v2935_v45, 2  ;;  %v2955_v37 = vrot.slane %v2953_v58, 2  ;;  %v2964_v45 = vrot.slane %v2962_v11, 2 }
  0xc1   : > { %4781 = vmatprep.mubr.msk.bf16.mxu0 %vm505_vm2, %v2633_v39  ;;  %v2947_v39 = vshll.u32 %v5726_v50, 16  ;;  %v2989_v58 = vshrl.u32 %v5781_v13, 16  ;;  %v3001_v11 = vshll.u32 %v5786_v8, 16 }
  0xc2   : > { %v2933_v63 = vsel %vm2916_vm6, %v2924_v35, %v2932_v44  ;;  %v992_v35 = vsel %vm963_vm5, %v989_v16, %v991_v30 }
  0xc3   : > { %v2949_v17 = vrot.slane %v2947_v39, 3 }
  0xc5   : > { %4614 = vmatmul.mubr.msk.bf16.gmra.mrb[12].mxu1 %vm505_vm2, %v980_v33  ;;  %v2639_v33 = vsel %vm2163_vm4, %v2636_v34, %v2638_v0  ;;  %v2956_v34 = vshll.u32 %v5738_v53, 16  ;;  %v2950_v49 = vor.u32 %v2949_v17, %v2946_v9  ;;  %v3456_v0 = vsel %vm560_vm0, %v5749_v29, 0 }
  0xc6   : > { %4617 = vmatprep.mubr.msk.bf16.mxu1 %vm505_vm2, %v982_v51  ;;  %v2940_v51 = vrot.slane %v2938_v23, 3  ;;  %v2967_v23 = vrot.slane %v2965_v6, 3  ;;  %v2980_v29 = vshrl.u32 %v5767_v1, 16 }
  0xc7   : > { %v2958_v18 = vrot.slane %v2956_v34, 3  ;;  %v2992_v34 = vshll.u32 %v5781_v13, 16 }
  0xc8   : > { %4782 = vmatmul.mubr.msk.bf16.gmra.mrb[28].mxu0 %vm505_vm2, %v2635_v24  ;;  %v2941_v24 = vor.u32 %v2940_v51, %v2937_v61  ;;  %v2968_v39 = vor.u32 %v2967_v23, %v2964_v45  ;;  %v2973_v61 = vrot.slane %v2971_v41, 2  ;;  %v2976_v51 = vrot.slane %v2974_v32, 3 }
  0xc9   : > { %4785 = vmatprep.mubr.msk.bf16.mxu0 %vm505_vm2, %v2637_v54  ;;  %v990_v54 = vsel %vm963_vm5, %v987_v19, %v989_v16  ;;  %v2983_v19 = vshll.u32 %v5767_v1, 16  ;;  %v2982_v17 = vrot.slane %v2980_v29, 2  ;;  %v3003_v23 = vrot.slane %v3001_v11, 3  ;;  %v5255_v29 = vld [vmem:[%s5353_s27 + $0x18] sm:$0xff]  }
  0xca   : > { %v2942_v42 = vsel %vm2916_vm6, %v2932_v44, %v2941_v24  ;;  %v2959_v44 = vor.u32 %v2958_v18, %v2955_v37  ;;  %v2994_v37 = vrot.slane %v2992_v34, 3  ;;  %v1403_v18 = vrot.slane %v5384_v20, 1 }
  0xcb   : > { %v3007_v32 = vshrl.u32 %v5799_v47, 16  ;;  %v3010_v20 = vshll.u32 %v5799_v47, 16  ;;  %v3028_v34 = vshll.u32 %v5819_v5, 16  ;;  %v3037_v11 = vshll.u32 %v5828_v21, 16 }
  0xcc   : > { %v2960_v16 = vsel %vm2916_vm6, %v2950_v49, %v2959_v44  ;;  %v2969_v9 = vsel %vm2916_vm6, %v2959_v44, %v2968_v39 }
  0xcd   : > { %4618 = vmatmul.mubr.msk.bf16.gmra.mrb[16].mxu1 %vm505_vm2, %v984_v10  ;;  %v993_v10 = vrot.slane %v5557_v40, 1 }
  0xce   : > { %4621 = vmatprep.mubr.msk.bf16.mxu1 %vm505_vm2, %v986_v25  ;;  %v2951_v25 = vsel %vm2916_vm6, %v2941_v24, %v2950_v49 }
  0xcf   : > { %v994_v40 = vsel %vm963_vm5, %v991_v30, %v993_v10  ;;  %v999_v30 = vrot.slane %v5602_v27, 1 }
  0xd0   : > { %4786 = vmatmul.mubr.msk.bf16.gmra.mrb[32].mxu0 %vm505_vm2, %v2639_v33  ;;  %v995_v33 = vrot.slane %v5572_v56, 1 }
  0xd1   : > { %4791 = vmatprep.mubr.msk.bf16.mxu0 %vm505_vm2, %v2933_v63  ;;  %v997_v63 = vrot.slane %v5579_v4, 1  ;;  %v2998_v4 = vshrl.u32 %v5786_v8, 16 }
  0xd2   : > { %v996_v24 = vsel %vm963_vm5, %v993_v10, %v995_v33  ;;  %v5254_v10 = vld [vmem:[%s5353_s27 + $0x10] sm:$0xff]  }
  0xd3   : > { %v998_v56 = vsel %vm963_vm5, %v995_v33, %v997_v63  ;;  %v3000_v45 = vrot.slane %v2998_v4, 2  ;;  %v3034_v4 = vshrl.u32 %v5828_v21, 16 }
  0xd5   : > { %4622 = vmatmul.mubr.msk.bf16.gmra.mrb[20].mxu1 %vm505_vm2, %v988_v48  ;;  %v2985_v48 = vrot.slane %v2983_v19, 3  ;;  %v3004_v44 = vor.u32 %v3003_v23, %v3000_v45  ;;  %v1406_v19 = vrot.slane %v5255_v29, 1  ;;  %v3036_v45 = vrot.slane %v3034_v4, 2 }
  0xd6   : > { %4625 = vmatprep.mubr.msk.bf16.mxu1 %vm505_vm2, %v990_v54  ;;  %v2977_v54 = vor.u32 %v2976_v51, %v2973_v61  ;;  %v3009_v61 = vrot.slane %v3007_v32, 2  ;;  %v3012_v51 = vrot.slane %v3010_v20, 3  ;;  %v3039_v23 = vrot.slane %v3037_v11, 3  ;;  %v5261_v11 = vld [vmem:[%s5353_s27 + $0x48] sm:$0xff]  }
  0xd7   : > { %v2986_v49 = vor.u32 %v2985_v48, %v2982_v17  ;;  %v3046_v32 = vshll.u32 %v5841_v36, 16  ;;  %v3073_v4 = vshll.u32 %v5863_v14, 16 }
  0xd8   : > { %4792 = vmatmul.mubr.msk.bf16.vlgmr.msra.gmra.mrb[0].mxu0 %vm505_vm2, %v2942_v42  ;;  %v2978_v6 = vsel %vm2916_vm6, %v2968_v39, %v2977_v54  ;;  %v2991_v42 = vrot.slane %v2989_v58, 2  ;;  %v3019_v39 = vshll.u32 %v5804_v52, 16  ;;  %v3025_v58 = vshrl.u32 %v5819_v5, 16 }
  0xd9   : > { %4828 = vmatpush3.bf16.msra.mxu0 %v3456_v0  ;;  %4795 = vmatprep.mubr.msk.bf16.mxu0 %vm505_vm2, %v2951_v25  ;;  %v1404_v0 = vrot.slane %v5254_v10, 1  ;;  %v2987_v25 = vsel %vm2916_vm6, %v2977_v54, %v2986_v49  ;;  %v3013_v54 = vor.u32 %v3012_v51, %v3009_v61  ;;  %v5258_v10 = vld [vmem:[%s5353_s27 + $0x30] sm:$0xff]   ;;  %v3040_v20 = vor.u32 %v3039_v23, %v3036_v45  ;;  %v5260_v51 = vld [vmem:[%s5353_s27 + $0x40] sm:$0xff]  }
  0xda   : > { %v2995_v41 = vor.u32 %v2994_v37, %v2991_v42  ;;  %v3021_v48 = vrot.slane %v3019_v39, 3  ;;  %v3027_v37 = vrot.slane %v3025_v58, 2  ;;  %v5259_v39 = vld [vmem:[%s5353_s27 + $0x38] sm:$0xff]   ;;  %v3048_v61 = vrot.slane %v3046_v32, 3 }
  0xdb   : > { %v1405_v27 = vsel %vm963_vm5, %v1403_v18, %v1404_v0  ;;  %v3014_v42 = vsel %vm2916_vm6, %v3004_v44, %v3013_v54  ;;  %v3030_v18 = vrot.slane %v3028_v34, 3  ;;  %v1414_v29 = vrot.slane %v5259_v39, 1 }
  0xdc   : > { %v2996_v33 = vsel %vm2916_vm6, %v2986_v49, %v2995_v41  ;;  %v3064_v58 = vshll.u32 %v5859_v62, 16  ;;  %v3075_v23 = vrot.slane %v3073_v4, 3  ;;  %v3369_v4 = vrot.slane %v5726_v50, 3 }
  0xdd   : > { %4626 = vmatmul.mubr.msk.bf16.gmra.mrb[24].mxu1 %vm505_vm2, %v992_v35  ;;  %v1000_v35 = vsel %vm963_vm5, %v997_v63, %v999_v30  ;;  %v3371_v50 = vrot.slane %v5738_v53, 3 }
  0xde   : > { %4629 = vmatprep.mubr.msk.bf16.mxu1 %vm505_vm2, %v994_v40  ;;  %v3016_v40 = vshrl.u32 %v5804_v52, 16 }
  0xe0   : > { %4796 = vmatmul.mubr.msk.bf16.gmra.mrb[4].mxu0 %vm505_vm2, %v2960_v16  ;;  %v5256_v16 = vld [vmem:[%s5353_s27 + $0x20] sm:$0xff]   ;;  %v3018_v17 = vrot.slane %v3016_v40, 2  ;;  %v3055_v40 = vshll.u32 %v5846_v43, 16 }
  0xe1   : > { %4799 = vmatprep.mubr.msk.bf16.mxu0 %vm505_vm2, %v2969_v9  ;;  %v1408_v63 = vrot.slane %v5256_v16, 1  ;;  %v3005_v9 = vsel %vm2916_vm6, %v2995_v41, %v3004_v44  ;;  %v3031_v41 = vor.u32 %v3030_v18, %v3027_v37  ;;  %v3052_v44 = vshrl.u32 %v5846_v43, 16  ;;  %v5262_v18 = vld [vmem:[%s5353_s27 + $0x50] sm:$0xff]  }
  0xe2   : > { %v3022_v49 = vor.u32 %v3021_v48, %v3018_v17  ;;  %v1416_v16 = vrot.slane %v5260_v51, 1  ;;  %v3057_v17 = vrot.slane %v3055_v40, 3  ;;  %v3066_v37 = vrot.slane %v3064_v58, 3  ;;  %v5263_v40 = vld [vmem:[%s5353_s27 + $0x58] sm:$0xff]  }
  0xe3   : > { %v1422_v39 = vrot.slane %v5263_v40, 1  ;;  %v1825_v40 = vshrl.u32 %v5648_v57, 16 }
  0xe5   : > { %4630 = vmatmul.mubr.msk.bf16.gmra.mrb[28].mxu1 %vm505_vm2, %v996_v24  ;;  %v1407_v24 = vsel %vm963_vm5, %v1404_v0, %v1406_v19  ;;  %v1412_v0 = vrot.slane %v5258_v10, 1  ;;  %v1420_v10 = vrot.slane %v5262_v18, 1  ;;  %v3373_v18 = vrot.slane %v5744_v28, 3 }
  0xe6   : > { %4633 = vmatprep.mubr.msk.bf16.mxu1 %vm505_vm2, %v998_v56  ;;  %v1409_v56 = vsel %vm963_vm5, %v1406_v19, %v1408_v63  ;;  %v3032_v19 = vsel %vm2916_vm6, %v3022_v49, %v3031_v41 }
  0xe7   : > { %v1415_v48 = vsel %vm963_vm5, %v1412_v0, %v1414_v29  ;;  %v3374_v53 = vsel %vm3363_vm7, %v3371_v50, %v3373_v18 }
  0xe8   : > { %4800 = vmatmul.mubr.msk.bf16.gmra.mrb[8].mxu0 %vm505_vm2, %v2978_v6  ;;  %v5257_v6 = vld [vmem:[%s5353_s27 + $0x28] sm:$0xff]  }
  0xe9   : > { %4803 = vmatprep.mubr.msk.bf16.mxu0 %vm505_vm2, %v2987_v25  ;;  %v1410_v30 = vrot.slane %v5257_v6, 1  ;;  %v3023_v25 = vsel %vm2916_vm6, %v3013_v54, %v3022_v49  ;;  %v1417_v54 = vsel %vm963_vm5, %v1414_v29, %v1416_v16  ;;  %v3070_v49 = vshrl.u32 %v5863_v14, 16 }
  0xea   : > { %v1418_v6 = vrot.slane %v5261_v11, 1  ;;  %v1430_v11 = vrot.slane %v5666_v7, 1 }
  0xeb   : > { %v3072_v45 = vrot.slane %v3070_v49, 2 }
  0xed   : > { %4634 = vmatmul.mubr.msk.bf16.gmra.mrb[32].mxu1 %vm505_vm2, %v1000_v35  ;;  %v1411_v35 = vsel %vm963_vm5, %v1408_v63, %v1410_v30  ;;  %v3041_v63 = vsel %vm2916_vm6, %v3031_v41, %v3040_v20 }
  0xee   : > { %4639 = vmatprep.mubr.msk.bf16.mxu1 %vm505_vm2, %v1405_v27  ;;  %v3043_v27 = vshrl.u32 %v5841_v36, 16 }
  0xf0   : > { %4804 = vmatmul.mubr.msk.bf16.gmra.mrb[12].mxu0 %vm505_vm2, %v2996_v33  ;;  %v3045_v33 = vrot.slane %v3043_v27, 2 }
  0xf1   : > { %4807 = vmatprep.mubr.msk.bf16.mxu0 %vm505_vm2, %v3005_v9  ;;  %v3054_v9 = vrot.slane %v3052_v44, 2  ;;  %v3357_v44 = vld [vmem:[%s5353_s27 + $0x10] sm:$0x8] }
  0xf3   : > { %v3058_v34 = vor.u32 %v3057_v17, %v3054_v9 }
  0xf5   : > { %4640 = vmatmul.mubr.msk.bf16.vlgmr.msra.gmra.mrb[0].mxu1 %vm505_vm2, %v1407_v24  ;;  %v3049_v24 = vor.u32 %v3048_v61, %v3045_v33  ;;  %v1424_v61 = vrot.slane %v5629_v55, 1 }
  0xf6   : > { %4643 = vmatprep.mubr.msk.bf16.mxu1 %vm505_vm2, %v1409_v56  ;;  %4866 = vmatpush3.bf16.msra.mxu1 %v5335_v2  ;;  %v1413_v2 = vsel %vm963_vm5, %v1410_v30, %v1412_v0  ;;  %v3061_v56 = vshrl.u32 %v5859_v62, 16  ;;  %v5999_v0 = vld [vmem:[%s5353_s27 + $0xa0] ss:$0 sps:$4 sm:$0x77]  }
  0xf7   : > { %v3050_v30 = vsel %vm2916_vm6, %v3040_v20, %v3049_v24  ;;  %v3079_v27 = vshrl.u32 %v5999_v0, 16  ;;  %v3082_v32 = vshll.u32 %v5999_v0, 16  ;;  %v3076_v20 = vor.u32 %v3075_v23, %v3072_v45 }
  0xf8   : > { %4808 = vmatmul.mubr.msk.bf16.gmra.mrb[16].mxu0 %vm505_vm2, %v3014_v42  ;;  %v3063_v42 = vrot.slane %v3061_v56, 2  ;;  %v1425_v17 = vsel %vm963_vm5, %v1422_v39, %v1424_v61  ;;  %v1428_v56 = vrot.slane %v5654_v60, 1  ;;  %v1436_v45 = vrot.slane %v5686_v26, 1 }
  0xf9   : > { %4811 = vmatprep.mubr.msk.bf16.mxu0 %vm505_vm2, %v3023_v25  ;;  %v3059_v25 = vsel %vm2916_vm6, %v3049_v24, %v3058_v34  ;;  %v3084_v33 = vrot.slane %v3082_v32, 3  ;;  %v3365_v24 = vrot.slane %v5709_v38, 3  ;;  %v3367_v38 = vrot.slane %v5722_v46, 3 }
  0xfa   : > { %v3067_v41 = vor.u32 %v3066_v37, %v3063_v42  ;;  %v1431_v46 = vsel %vm963_vm5, %v1428_v56, %v1430_v11  ;;  %v1816_v23 = vshrl.u32 %v5629_v55, 16 }
  0xfb   : > { %v3370_v42 = vsel %vm3363_vm7, %v3367_v38, %v3369_v4 }
  0xfc   : > { %v3068_v29 = vsel %vm2916_vm6, %v3058_v34, %v3067_v41  ;;  %v3077_v51 = vsel %vm2916_vm6, %v3067_v41, %v3076_v20  ;;  %v5252_v41 = vld [vmem:[%s5353_s27 + $0x98] ss:$0 sps:$4 sm:$0x11]   ;;  %v1818_v32 = vrot.slane %v1816_v23, 1 }
  0xfd   : > { %4644 = vmatmul.mubr.msk.bf16.gmra.mrb[4].mxu1 %vm505_vm2, %v1411_v35  ;;  %v1419_v35 = vsel %vm963_vm5, %v1416_v16, %v1418_v6  ;;  %v4258_v16 = vcombine.low %v3357_v44, %v5696_v31  ;;  %v3377_v44 = vrot.slane %v5767_v1, 3 }
  0xfe   : > { %4647 = vmatprep.mubr.msk.bf16.mxu1 %vm505_vm2, %v1413_v2  ;;  %v1421_v2 = vsel %vm963_vm5, %v1418_v6, %v1420_v10  ;;  %v3368_v6 = vsel %vm3363_vm7, %v3365_v24, %v3367_v38 }
 0x100   : > { %4812 = vmatmul.mubr.msk.bf16.gmra.mrb[20].mxu0 %vm505_vm2, %v3032_v19  ;;  %v3081_v19 = vrot.slane %v3079_v27, 2 }
 0x101   : > { %4815 = vmatprep.mubr.msk.bf16.mxu0 %vm505_vm2, %v3041_v63  ;;  %v1423_v63 = vsel %vm963_vm5, %v1420_v10, %v1422_v39  ;;  %v1434_v10 = vrot.slane %v5682_v22, 1  ;;  %v1828_v39 = vshll.u32 %v5648_v57, 16 }
 0x102   : > { %v3085_v9 = vor.u32 %v3084_v33, %v3081_v19  ;;  %v1837_v33 = vshll.u32 %v5654_v60, 16 }
 0x103   : > { %v1437_v27 = vsel %vm963_vm5, %v1434_v10, %v1436_v45 }
 0x104   : > { %v3086_v31 = vsel %vm2916_vm6, %v3076_v20, %v3085_v9 }
 0x105   : > { %4648 = vmatmul.mubr.msk.bf16.gmra.mrb[8].mxu1 %vm505_vm2, %v1415_v48  ;;  %v3364_v48 = vrot.slane %v4258_v16, 3  ;;  %v1830_v16 = vrot.slane %v1828_v39, 2 }
 0x106   : > { %4651 = vmatprep.mubr.msk.bf16.mxu1 %vm505_vm2, %v1417_v54  ;;  %v1426_v54 = vrot.slane %v5648_v57, 1 }
 0x107   : > { %v3366_v58 = vsel %vm3363_vm7, %v3364_v48, %v3365_v24  ;;  %v3381_v48 = vrot.slane %v5786_v8, 3  ;;  %v1843_v24 = vshrl.u32 %v5666_v7, 16 }
 0x108   : > { %4816 = vmatmul.mubr.msk.bf16.gmra.mrb[24].mxu0 %vm505_vm2, %v3050_v30  ;;  %v1427_v34 = vsel %vm963_vm5, %v1424_v61, %v1426_v54  ;;  %v1429_v49 = vsel %vm963_vm5, %v1426_v54, %v1428_v56  ;;  %v1432_v30 = vrot.slane %v5670_v12, 1  ;;  %v1846_v54 = vshll.u32 %v5666_v7, 16 }
 0x109   : > { %4819 = vmatprep.mubr.msk.bf16.mxu0 %vm505_vm2, %v3059_v25  ;;  %v3372_v25 = vsel %vm3363_vm7, %v3369_v4, %v3371_v50 }
 0x10a   : > { %v1433_v37 = vsel %vm963_vm5, %v1430_v11, %v1432_v30  ;;  %v1435_v28 = vsel %vm963_vm5, %v1432_v30, %v1434_v10  ;;  %v1848_v38 = vrot.slane %v1846_v54, 2  ;;  %v1861_v30 = vshrl.u32 %v5682_v22, 16 }
 0x10c   : > { %v1863_v10 = vrot.slane %v1861_v30, 1 }
 0x10d   : > { %4652 = vmatmul.mubr.msk.bf16.gmra.mrb[12].mxu1 %vm505_vm2, %v1419_v35  ;;  %v1819_v35 = vshll.u32 %v5629_v55, 16  ;;  %v1438_v55 = vrot.slane %v5252_v41, 1  ;;  %v1882_v41 = vshll.u32 %v5702_v59, 16 }
 0x10e   : > { %4655 = vmatprep.mubr.msk.bf16.mxu1 %vm505_vm2, %v1421_v2  ;;  %v3375_v2 = vrot.slane %v5763_v3, 3  ;;  %v1834_v3 = vshrl.u32 %v5654_v60, 16 }
 0x10f   : > { %v1821_v20 = vrot.slane %v1819_v35, 2  ;;  %v1439_v1 = vsel %vm963_vm5, %v1436_v45, %v1438_v55  ;;  %v3387_v45 = vrot.slane %v5819_v5, 3 }
 0x110   : > { %4820 = vmatmul.mubr.msk.bf16.gmra.mrb[28].mxu0 %vm505_vm2, %v3068_v29  ;;  %v3376_v29 = vsel %vm3363_vm7, %v3373_v18, %v3375_v2  ;;  %v3378_v61 = vsel %vm3363_vm7, %v3375_v2, %v3377_v44  ;;  %v1836_v9 = vrot.slane %v1834_v3, 1  ;;  %v3397_v3 = vrot.slane %v5863_v14, 3 }
 0x111   : > { %4823 = vmatprep.mubr.msk.bf16.mxu0 %vm505_vm2, %v3077_v51  ;;  %v1822_v19 = vor.u32 %v1821_v20, %v1818_v32  ;;  %v1827_v51 = vrot.slane %v1825_v40, 1  ;;  %v3393_v40 = vrot.slane %v5846_v43, 3 }
 0x113   : > { %v1823_v57 = vsel %vm1716_vm3, %v5543_v15, %v1822_v19  ;;  %v1831_v60 = vor.u32 %v1830_v16, %v1827_v51  ;;  %v1855_v15 = vshll.u32 %v5670_v12, 16 }
 0x115   : > { %4656 = vmatmul.mubr.msk.bf16.gmra.mrb[16].mxu1 %vm505_vm2, %v1423_v63  ;;  %v3379_v63 = vrot.slane %v5781_v13, 3  ;;  %v1852_v13 = vshrl.u32 %v5670_v12, 16  ;;  %v1832_v8 = vsel %vm1716_vm3, %v1822_v19, %v1831_v60  ;;  %v1857_v11 = vrot.slane %v1855_v15, 2 }
 0x116   : > { %4659 = vmatprep.mubr.msk.bf16.mxu1 %vm505_vm2, %v1425_v17  ;;  %v1839_v17 = vrot.slane %v1837_v33, 2 }
 0x117   : > { %v1854_v4 = vrot.slane %v1852_v13, 1 }
 0x118   : > { %4824 = vmatmul.mubr.msk.bf16.gmra.mrb[32].mxu0 %vm505_vm2, %v3086_v31  ;;  %v3380_v31 = vsel %vm3363_vm7, %v3377_v44, %v3379_v63  ;;  %v1840_v56 = vor.u32 %v1839_v17, %v1836_v9  ;;  %v3391_v44 = vrot.slane %v5841_v36, 3  ;;  %v3395_v36 = vrot.slane %v5859_v62, 3 }
 0x119   : > { %4829 = vmatprep.mubr.msk.bf16.mxu0 %vm505_vm2, %v3366_v58  ;;  %v3382_v58 = vsel %vm3363_vm7, %v3379_v63, %v3381_v48  ;;  %v1858_v50 = vor.u32 %v1857_v11, %v1854_v4 }
 0x11a   : > { %v1841_v7 = vsel %vm1716_vm3, %v1831_v60, %v1840_v56  ;;  %v3396_v43 = vsel %vm3363_vm7, %v3393_v40, %v3395_v36  ;;  %v3398_v33 = vsel %vm3363_vm7, %v3395_v36, %v3397_v3 }
 0x11d   : > { %4660 = vmatmul.mubr.msk.bf16.gmra.mrb[20].mxu1 %vm505_vm2, %v1427_v34  ;;  %v1845_v34 = vrot.slane %v1843_v24, 1 }
 0x11e   : > { %4663 = vmatprep.mubr.msk.bf16.mxu1 %vm505_vm2, %v1429_v49  ;;  %v3383_v49 = vrot.slane %v5799_v47, 3  ;;  %v1870_v47 = vshrl.u32 %v5686_v26, 16 }
 0x11f   : > { %v1849_v12 = vor.u32 %v1848_v38, %v1845_v34 }
 0x120   : > { %4830 = vmatmul.mubr.msk.bf16.vlgmr.msra.gmra.mrb[0].mxu0 %vm505_vm2, %v3368_v6  ;;  %v3385_v6 = vrot.slane %v5804_v52, 3  ;;  %v1872_v23 = vrot.slane %v1870_v47, 1 }
 0x121   : > { %4833 = vmatprep.mubr.msk.bf16.mxu0 %vm505_vm2, %v3370_v42  ;;  %v1864_v42 = vshll.u32 %v5682_v22, 16  ;;  %v1850_v52 = vsel %vm1716_vm3, %v1840_v56, %v1849_v12  ;;  %v1859_v22 = vsel %vm1716_vm3, %v1849_v12, %v1858_v50 }
 0x122   : > { %v3386_v18 = vsel %vm3363_vm7, %v3383_v49, %v3385_v6  ;;  %v3388_v2 = vsel %vm3363_vm7, %v3385_v6, %v3387_v45 }
 0x125   : > { %4664 = vmatmul.mubr.msk.bf16.gmra.mrb[24].mxu1 %vm505_vm2, %v1431_v46  ;;  %v3384_v46 = vsel %vm3363_vm7, %v3381_v48, %v3383_v49  ;;  %v6157_v49 = vld [vmem:[%s6295_s2] ss:$0 sm:$0xff] }
 0x126   : > { %4667 = vmatprep.mubr.msk.bf16.mxu1 %vm505_vm2, %v1433_v37  ;;  %v1873_v37 = vshll.u32 %v5686_v26, 16 }
 0x128   : > { %4834 = vmatmul.mubr.msk.bf16.gmra.mrb[4].mxu0 %vm505_vm2, %v3372_v25  ;;  %v1866_v25 = vrot.slane %v1864_v42, 2  ;;  %v1875_v35 = vrot.slane %v1873_v37, 2 }
 0x129   : > { %4837 = vmatprep.mubr.msk.bf16.mxu0 %vm505_vm2, %v3374_v53  ;;  %v3389_v53 = vrot.slane %v5828_v21, 3  ;;  %v1884_v21 = vrot.slane %v1882_v41, 2 }
 0x12a   : > { %v1867_v26 = vor.u32 %v1866_v25, %v1863_v10 }
 0x12b   : > { %v3390_v5 = vsel %vm3363_vm7, %v3387_v45, %v3389_v53  ;;  %v3392_v39 = vsel %vm3363_vm7, %v3389_v53, %v3391_v44 }
 0x12c   : > { %v1868_v32 = vsel %vm1716_vm3, %v1858_v50, %v1867_v26 }
 0x12d   : > { %4668 = vmatmul.mubr.msk.bf16.gmra.mrb[28].mxu1 %vm505_vm2, %v1435_v28  ;;  %v1879_v28 = vshrl.u32 %v5702_v59, 16 }
 0x12e   : > { %4671 = vmatprep.mubr.msk.bf16.mxu1 %vm505_vm2, %v1437_v27  ;;  %v1876_v27 = vor.u32 %v1875_v35, %v1872_v23 }
 0x12f   : > { %v1881_v20 = vrot.slane %v1879_v28, 1 }
 0x130   : > { %4838 = vmatmul.mubr.msk.bf16.gmra.mrb[8].mxu0 %vm505_vm2, %v3376_v29  ;;  %v1877_v55 = vsel %vm1716_vm3, %v1867_v26, %v1876_v27  ;;  %v3394_v29 = vsel %vm3363_vm7, %v3391_v44, %v3393_v40 }
 0x131   : > { %4841 = vmatprep.mubr.msk.bf16.mxu0 %vm505_vm2, %v3378_v61  ;;  %v1885_v59 = vor.u32 %v1884_v21, %v1881_v20  ;;  %v3399_v61 = vrot.slane %v5999_v0, 3 }
 0x133   : > { %v1886_v19 = vsel %vm1716_vm3, %v1876_v27, %v1885_v59 }
 0x135   : > { %4672 = vmatmul.mubr.msk.bf16.gmra.mrb[32].mxu1 %vm505_vm2, %v1439_v1  ;;  %v3400_v1 = vsel %vm3363_vm7, %v3397_v3, %v3399_v61 }
 0x136   : > { %4697 = vmatprep.mubr.msk.bf16.mxu1 %vm505_vm2, %v1823_v57 }
 0x138   : > { %4842 = vmatmul.mubr.msk.bf16.gmra.mrb[12].mxu0 %vm505_vm2, %v3380_v31 }
 0x139   : > { %4845 = vmatprep.mubr.msk.bf16.mxu0 %vm505_vm2, %v3382_v58 }
 0x13d   : > { %4698 = vmatmul.mubr.msk.bf16.vlgmr.msra.gmra.mrb[20].mxu1 %vm505_vm2, %v1832_v8 }
 0x13e   : > { %4701 = vmatprep.mubr.msk.bf16.mxu1 %vm505_vm2, %v1841_v7 }
 0x140   : > { %4846 = vmatmul.mubr.msk.bf16.gmra.mrb[16].mxu0 %vm505_vm2, %v3384_v46 }
 0x141   : > { %4849 = vmatprep.mubr.msk.bf16.mxu0 %vm505_vm2, %v3386_v18 }
 0x145   : > { %4702 = vmatmul.mubr.msk.bf16.gmra.mrb[24].mxu1 %vm505_vm2, %v1850_v52 }
 0x146   : > { %4705 = vmatprep.mubr.msk.bf16.mxu1 %vm505_vm2, %v1859_v22 }
 0x148   : > { %4850 = vmatmul.mubr.msk.bf16.gmra.mrb[20].mxu0 %vm505_vm2, %v3388_v2 }
 0x149   : > { %4853 = vmatprep.mubr.msk.bf16.mxu0 %vm505_vm2, %v3390_v5 }
 0x14d   : > { %4706 = vmatmul.mubr.msk.bf16.gmra.mrb[28].mxu1 %vm505_vm2, %v1868_v32 }
 0x14e   : > { %4709 = vmatprep.mubr.msk.bf16.mxu1 %vm505_vm2, %v1877_v55 }
 0x150   : > { %4854 = vmatmul.mubr.msk.bf16.gmra.mrb[24].mxu0 %vm505_vm2, %v3392_v39 }
 0x151   : > { %4857 = vmatprep.mubr.msk.bf16.mxu0 %vm505_vm2, %v3394_v29 }
 0x155   : > { %4710 = vmatmul.mubr.msk.bf16.gmra.mrb[32].mxu1 %vm505_vm2, %v1886_v19 }
 0x158   : > { %4858 = vmatmul.mubr.msk.bf16.gmra.mrb[28].mxu0 %vm505_vm2, %v3396_v43 }
 0x159   : > { %4861 = vmatprep.mubr.msk.bf16.mxu0 %vm505_vm2, %v3398_v33 }
 0x160   : > { %4862 = vmatmul.mubr.msk.bf16.gmra.mrb[32].mxu0 %vm505_vm2, %v3400_v1 }
 0x1c8   : > { %v4641_v51 = vpop.f32.mrb[0].mxu1 }
 0x1c9   : > { %v1531_v62 = vpop.f32.mrb[1].mxu1 }
 0x1ca   : > { %v4642_v16 = vpop.f32.mrb[2].mxu1 }
 0x1cb   : > { %v1534_v14 = vpop.f32.mrb[3].mxu1 }
 0x1d0   : > { %v4645_v63 = vpop.f32.mrb[4].mxu1 }
 0x1d1   : > { %v1547_v57 = vpop.f32.mrb[5].mxu1 }
 0x1d2   : > { %v4646_v9 = vpop.f32.mrb[6].mxu1 }
 0x1d3   : > { %v1550_v17 = vpop.f32.mrb[7].mxu1 }
 0x1d8   : > { %v4649_v48 = vpop.f32.mrb[8].mxu1 }
 0x1d9   : > { %v6132_v60 = vpop.f32.mrb[9].mxu1 }
 0x1da   : > { %v6134_v24 = vpop.f32.mrb[10].mxu1 }
 0x1db   : > { %v6136_v54 = vpop.f32.mrb[11].mxu1 }
 0x1e0   : > { %v6138_v0 = vpop.f32.mrb[12].mxu1 }
 0x1e1   : > { %v6140_v31 = vpop.f32.mrb[13].mxu1 }
 0x1e2   : > { %v6142_v56 = vpop.f32.mrb[14].mxu1 }
 0x1e3   : > { %v6144_v13 = vpop.f32.mrb[15].mxu1 }
 0x1e8   : > { %v6146_v15 = vpop.f32.mrb[16].mxu1 }
 0x1e9   : > { %v6148_v58 = vpop.f32.mrb[17].mxu1 }
 0x1ea   : > { %v6150_v8 = vpop.f32.mrb[18].mxu1 }
 0x1eb   : > { %v6152_v34 = vpop.f32.mrb[19].mxu1 }
 0x1f3   : > { %v4831_v38 = vpop.f32.mrb[0].mxu0 }
 0x1f4   : > { %v4867_v7 = vadd.f32 %v4831_v38, %v4641_v51  ;;  %v3492_v4 = vpop.f32.mrb[1].mxu0 }
 0x1f5   : > { %v4868_v11 = vadd.f32 %v3492_v4, %v1531_v62  ;;  %v4832_v6 = vpop.f32.mrb[2].mxu0 }
 0x1f6   : > { %v3680_v12 = vadd.f32 %v4867_v7, %v6157_v49  ;;  %v4869_v30 = vadd.f32 %v4832_v6, %v4642_v16  ;;  %v3495_v42 = vpop.f32.mrb[3].mxu0 }
 0x1f7   : > { %v3678_v46 = vadd.f32 %v4868_v11, %v6157_v49  ;;  %v4870_v50 = vadd.f32 %v3495_v42, %v1534_v14 }
 0x1f8   : > { %v3716_v47 = vmax.f32 %v3680_v12, 0.0  ;;  %v3681_v37 = vadd.f32 %v4869_v30, %v6157_v49 }
 0x1f9   : > { %v3714_v18 = vmax.f32 %v3678_v46, 0.0  ;;  %v3679_v52 = vadd.f32 %v4870_v50, %v6157_v49 }
 0x1fa   : > { %v4318_v10 = vpack.c.bf16 %v3716_v47, %v3716_v47  ;;  %v3717_v25 = vmax.f32 %v3681_v37, 0.0 }
 0x1fb   : > { %v4316_v45 = vpack.c.bf16 %v3714_v18, %v3714_v18  ;;  %v3715_v22 = vmax.f32 %v3679_v52, 0.0  ;;  %v4835_v23 = vpop.f32.mrb[4].mxu0 }
 0x1fc   : > { %3897 = vst.msk [vmem:[%s6166_s22 + $0x8] sm:$0xf] %vm3894_vm8, %v4318_v10  ;;  %v4319_v35 = vpack.c.bf16 %v3717_v25, %v3717_v25  ;;  %v4871_v53 = vadd.f32 %v4835_v23, %v4645_v63  ;;  %v3508_v26 = vpop.f32.mrb[5].mxu0 }
 0x1fd   : > { %3895 = vst.msk [vmem:[%s6166_s22] sm:$0xf] %vm3894_vm8, %v4316_v45  ;;  %v4317_v28 = vpack.c.bf16 %v3715_v22, %v3715_v22  ;;  %v4872_v41 = vadd.f32 %v3508_v26, %v1547_v57  ;;  %v4836_v2 = vpop.f32.mrb[6].mxu0 }
 0x1fe   : > { %3898 = vst.msk [vmem:[%s6166_s22 + $0xc] sm:$0xf] %vm3894_vm8, %v4319_v35  ;;  %v3684_v27 = vadd.f32 %v4871_v53, %v6157_v49  ;;  %v4873_v5 = vadd.f32 %v4836_v2, %v4646_v9  ;;  %v3511_v32 = vpop.f32.mrb[7].mxu0 }
 0x1ff   : > { %3896 = vst.msk [vmem:[%s6166_s22 + $0x4] sm:$0xf] %vm3894_vm8, %v4317_v28  ;;  %v3682_v20 = vadd.f32 %v4872_v41, %v6157_v49  ;;  %v4874_v21 = vadd.f32 %v3511_v32, %v1550_v17 }
 0x200   : > { %v3720_v44 = vmax.f32 %v3684_v27, 0.0  ;;  %v3685_v55 = vadd.f32 %v4873_v5, %v6157_v49 }
 0x201   : > { %v3718_v40 = vmax.f32 %v3682_v20, 0.0  ;;  %v3683_v59 = vadd.f32 %v4874_v21, %v6157_v49 }
 0x202   : > { %v4322_v39 = vpack.c.bf16 %v3720_v44, %v3720_v44  ;;  %v3721_v29 = vmax.f32 %v3685_v55, 0.0 }
 0x203   : > { %v4320_v19 = vpack.c.bf16 %v3718_v40, %v3718_v40  ;;  %v3719_v36 = vmax.f32 %v3683_v59, 0.0  ;;  %v4839_v3 = vpop.f32.mrb[8].mxu0 }
 0x204   : > { %3901 = vst.msk [vmem:[%s6166_s22 + $0x18] sm:$0xf] %vm3894_vm8, %v4322_v39  ;;  %v4323_v43 = vpack.c.bf16 %v3721_v29, %v3721_v29  ;;  %v4875_v33 = vadd.f32 %v4839_v3, %v4649_v48  ;;  %v3524_v61 = vpop.f32.mrb[9].mxu0 }
 0x205   : > { %3899 = vst.msk [vmem:[%s6166_s22 + $0x10] sm:$0xf] %vm3894_vm8, %v4320_v19  ;;  %v4321_v1 = vpack.c.bf16 %v3719_v36, %v3719_v36  ;;  %v4876_v51 = vadd.f32 %v3524_v61, %v6132_v60  ;;  %v4840_v62 = vpop.f32.mrb[10].mxu0 }
 0x206   : > { %3902 = vst.msk [vmem:[%s6166_s22 + $0x1c] sm:$0xf] %vm3894_vm8, %v4323_v43  ;;  %v3688_v16 = vadd.f32 %v4875_v33, %v6157_v49  ;;  %v4877_v14 = vadd.f32 %v4840_v62, %v6134_v24  ;;  %v3527_v63 = vpop.f32.mrb[11].mxu0 }
 0x207   : > { %3900 = vst.msk [vmem:[%s6166_s22 + $0x14] sm:$0xf] %vm3894_vm8, %v4321_v1  ;;  %v3686_v57 = vadd.f32 %v4876_v51, %v6157_v49  ;;  %v4878_v9 = vadd.f32 %v3527_v63, %v6136_v54 }
 0x208   : > { %v3724_v17 = vmax.f32 %v3688_v16, 0.0  ;;  %v3689_v48 = vadd.f32 %v4877_v14, %v6157_v49 }
 0x209   : > { %v3722_v60 = vmax.f32 %v3686_v57, 0.0  ;;  %v3687_v38 = vadd.f32 %v4878_v9, %v6157_v49 }
 0x20a   : > { %v4326_v7 = vpack.c.bf16 %v3724_v17, %v3724_v17  ;;  %v3725_v4 = vmax.f32 %v3689_v48, 0.0 }
 0x20b   : > { %v4324_v11 = vpack.c.bf16 %v3722_v60, %v3722_v60  ;;  %v3723_v24 = vmax.f32 %v3687_v38, 0.0  ;;  %v4843_v6 = vpop.f32.mrb[12].mxu0 }
 0x20c   : > { %3905 = vst.msk [vmem:[%s6166_s22 + $0x28] sm:$0xf] %vm3894_vm8, %v4326_v7  ;;  %v4327_v12 = vpack.c.bf16 %v3725_v4, %v3725_v4  ;;  %v4879_v30 = vadd.f32 %v4843_v6, %v6138_v0  ;;  %v3540_v42 = vpop.f32.mrb[13].mxu0 }
 0x20d   : > { %3903 = vst.msk [vmem:[%s6166_s22 + $0x20] sm:$0xf] %vm3894_vm8, %v4324_v11  ;;  %v4325_v54 = vpack.c.bf16 %v3723_v24, %v3723_v24  ;;  %v4880_v46 = vadd.f32 %v3540_v42, %v6140_v31  ;;  %v4844_v50 = vpop.f32.mrb[14].mxu0 }
 0x20e   : > { %3906 = vst.msk [vmem:[%s6166_s22 + $0x2c] sm:$0xf] %vm3894_vm8, %v4327_v12  ;;  %v3692_v47 = vadd.f32 %v4879_v30, %v6157_v49  ;;  %v4881_v37 = vadd.f32 %v4844_v50, %v6142_v56  ;;  %v3543_v18 = vpop.f32.mrb[15].mxu0 }
 0x20f   : > { %3904 = vst.msk [vmem:[%s6166_s22 + $0x24] sm:$0xf] %vm3894_vm8, %v4325_v54  ;;  %v3690_v0 = vadd.f32 %v4880_v46, %v6157_v49  ;;  %v4882_v10 = vadd.f32 %v3543_v18, %v6144_v13 }
 0x210   : > { %v4699_v52 = vpop.f32.mrb[20].mxu1  ;;  %v3728_v45 = vmax.f32 %v3692_v47, 0.0  ;;  %v3693_v31 = vadd.f32 %v4881_v37, %v6157_v49 }
 0x211   : > { %v2058_v25 = vpop.f32.mrb[21].mxu1  ;;  %v3726_v23 = vmax.f32 %v3690_v0, 0.0  ;;  %v3691_v35 = vadd.f32 %v4882_v10, %v6157_v49 }
 0x212   : > { %v4700_v22 = vpop.f32.mrb[22].mxu1  ;;  %v4330_v53 = vpack.c.bf16 %v3728_v45, %v3728_v45  ;;  %v3729_v26 = vmax.f32 %v3693_v31, 0.0 }
 0x213   : > { %v2061_v56 = vpop.f32.mrb[23].mxu1  ;;  %v4328_v28 = vpack.c.bf16 %v3726_v23, %v3726_v23  ;;  %v3727_v41 = vmax.f32 %v3691_v35, 0.0  ;;  %v4847_v2 = vpop.f32.mrb[16].mxu0 }
 0x214   : > { %3909 = vst.msk [vmem:[%s6166_s22 + $0x38] sm:$0xf] %vm3894_vm8, %v4330_v53  ;;  %v4331_v13 = vpack.c.bf16 %v3729_v26, %v3729_v26  ;;  %v4883_v27 = vadd.f32 %v4847_v2, %v6146_v15  ;;  %v3556_v5 = vpop.f32.mrb[17].mxu0 }
 0x215   : > { %3907 = vst.msk [vmem:[%s6166_s22 + $0x30] sm:$0xf] %vm3894_vm8, %v4328_v28  ;;  %v4329_v32 = vpack.c.bf16 %v3727_v41, %v3727_v41  ;;  %v4884_v20 = vadd.f32 %v3556_v5, %v6148_v58  ;;  %v4848_v21 = vpop.f32.mrb[18].mxu0 }
 0x216   : > { %3910 = vst.msk [vmem:[%s6166_s22 + $0x3c] sm:$0xf] %vm3894_vm8, %v4331_v13  ;;  %v3696_v44 = vadd.f32 %v4883_v27, %v6157_v49  ;;  %v4885_v55 = vadd.f32 %v4848_v21, %v6150_v8  ;;  %v3559_v40 = vpop.f32.mrb[19].mxu0 }
 0x217   : > { %3908 = vst.msk [vmem:[%s6166_s22 + $0x34] sm:$0xf] %vm3894_vm8, %v4329_v32  ;;  %v3694_v15 = vadd.f32 %v4884_v20, %v6157_v49  ;;  %v4886_v39 = vadd.f32 %v3559_v40, %v6152_v34 }
 0x218   : > { %v4703_v59 = vpop.f32.mrb[24].mxu1  ;;  %v3732_v19 = vmax.f32 %v3696_v44, 0.0  ;;  %v3697_v58 = vadd.f32 %v4885_v55, %v6157_v49 }
 0x219   : > { %v2074_v29 = vpop.f32.mrb[25].mxu1  ;;  %v3730_v3 = vmax.f32 %v3694_v15, 0.0  ;;  %v3695_v43 = vadd.f32 %v4886_v39, %v6157_v49 }
 0x21a   : > { %v4704_v36 = vpop.f32.mrb[26].mxu1  ;;  %v4334_v33 = vpack.c.bf16 %v3732_v19, %v3732_v19  ;;  %v3733_v61 = vmax.f32 %v3697_v58, 0.0 }
 0x21b   : > { %v2077_v8 = vpop.f32.mrb[27].mxu1  ;;  %v4332_v1 = vpack.c.bf16 %v3730_v3, %v3730_v3  ;;  %v3731_v51 = vmax.f32 %v3695_v43, 0.0  ;;  %v4851_v62 = vpop.f32.mrb[20].mxu0 }
 0x21c   : > { %3913 = vst.msk [vmem:[%s6166_s22 + $0x48] sm:$0xf] %vm3894_vm8, %v4334_v33  ;;  %v4335_v34 = vpack.c.bf16 %v3733_v61, %v3733_v61  ;;  %v4887_v16 = vadd.f32 %v4851_v62, %v4699_v52  ;;  %v3572_v14 = vpop.f32.mrb[21].mxu0 }
 0x21d   : > { %3911 = vst.msk [vmem:[%s6166_s22 + $0x40] sm:$0xf] %vm3894_vm8, %v4332_v1  ;;  %v4333_v63 = vpack.c.bf16 %v3731_v51, %v3731_v51  ;;  %v4888_v57 = vadd.f32 %v3572_v14, %v2058_v25  ;;  %v4852_v9 = vpop.f32.mrb[22].mxu0 }
 0x21e   : > { %3914 = vst.msk [vmem:[%s6166_s22 + $0x4c] sm:$0xf] %vm3894_vm8, %v4335_v34  ;;  %v3700_v17 = vadd.f32 %v4887_v16, %v6157_v49  ;;  %v4889_v48 = vadd.f32 %v4852_v9, %v4700_v22  ;;  %v3575_v60 = vpop.f32.mrb[23].mxu0 }
 0x21f   : > { %3912 = vst.msk [vmem:[%s6166_s22 + $0x44] sm:$0xf] %vm3894_vm8, %v4333_v63  ;;  %v3698_v7 = vadd.f32 %v4888_v57, %v6157_v49  ;;  %v4890_v4 = vadd.f32 %v3575_v60, %v2061_v56 }
 0x220   : > { %v4707_v38 = vpop.f32.mrb[28].mxu1  ;;  %v3736_v24 = vmax.f32 %v3700_v17, 0.0  ;;  %v3701_v6 = vadd.f32 %v4889_v48, %v6157_v49 }
 0x221   : > { %v2090_v11 = vpop.f32.mrb[29].mxu1  ;;  %v3734_v30 = vmax.f32 %v3698_v7, 0.0  ;;  %v3699_v42 = vadd.f32 %v4890_v4, %v6157_v49 }
 0x222   : > { %v4708_v12 = vpop.f32.mrb[30].mxu1  ;;  %v4338_v46 = vpack.c.bf16 %v3736_v24, %v3736_v24  ;;  %v3737_v50 = vmax.f32 %v3701_v6, 0.0 }
 0x223   : > { %v2093_v54 = vpop.f32.mrb[31].mxu1  ;;  %v4336_v47 = vpack.c.bf16 %v3734_v30, %v3734_v30  ;;  %v3735_v37 = vmax.f32 %v3699_v42, 0.0  ;;  %v4855_v18 = vpop.f32.mrb[24].mxu0 }
 0x224   : > { %3917 = vst.msk [vmem:[%s6166_s22 + $0x58] sm:$0xf] %vm3894_vm8, %v4338_v46  ;;  %v4339_v52 = vpack.c.bf16 %v3737_v50, %v3737_v50  ;;  %v4891_v0 = vadd.f32 %v4855_v18, %v4703_v59  ;;  %v3588_v10 = vpop.f32.mrb[25].mxu0 }
 0x225   : > { %3915 = vst.msk [vmem:[%s6166_s22 + $0x50] sm:$0xf] %vm3894_vm8, %v4336_v47  ;;  %v4337_v25 = vpack.c.bf16 %v3735_v37, %v3735_v37  ;;  %v4892_v45 = vadd.f32 %v3588_v10, %v2074_v29  ;;  %v4856_v31 = vpop.f32.mrb[26].mxu0 }
 0x226   : > { %3918 = vst.msk [vmem:[%s6166_s22 + $0x5c] sm:$0xf] %vm3894_vm8, %v4339_v52  ;;  %v3704_v22 = vadd.f32 %v4891_v0, %v6157_v49  ;;  %v4893_v23 = vadd.f32 %v4856_v31, %v4704_v36  ;;  %v3591_v35 = vpop.f32.mrb[27].mxu0 }
 0x227   : > { %3916 = vst.msk [vmem:[%s6166_s22 + $0x54] sm:$0xf] %vm3894_vm8, %v4337_v25  ;;  %v3702_v53 = vadd.f32 %v4892_v45, %v6157_v49  ;;  %v4894_v26 = vadd.f32 %v3591_v35, %v2077_v8 }
 0x228   : > { %v4711_v56 = vpop.f32.mrb[32].mxu1  ;;  %v3740_v41 = vmax.f32 %v3704_v22, 0.0  ;;  %v3705_v2 = vadd.f32 %v4893_v23, %v6157_v49 }
 0x229   : > { %v2106_v28 = vpop.f32.mrb[33].mxu1  ;;  %v3738_v27 = vmax.f32 %v3702_v53, 0.0  ;;  %v3703_v5 = vadd.f32 %v4894_v26, %v6157_v49 }
 0x22a   : > { %v4712_v13 = vpop.f32.mrb[34].mxu1  ;;  %v4342_v20 = vpack.c.bf16 %v3740_v41, %v3740_v41  ;;  %v3741_v21 = vmax.f32 %v3705_v2, 0.0 }
 0x22b   : > { %v2109_v32 = vpop.f32.mrb[35].mxu1  ;;  %v4340_v44 = vpack.c.bf16 %v3738_v27, %v3738_v27  ;;  %v3739_v55 = vmax.f32 %v3703_v5, 0.0  ;;  %v4859_v40 = vpop.f32.mrb[28].mxu0 }
 0x22c   : > { %3921 = vst.msk [vmem:[%s6166_s22 + $0x68] sm:$0xf] %vm3894_vm8, %v4342_v20  ;;  %v4343_v59 = vpack.c.bf16 %v3741_v21, %v3741_v21  ;;  %v4895_v15 = vadd.f32 %v4859_v40, %v4707_v38  ;;  %v3604_v39 = vpop.f32.mrb[29].mxu0 }
 0x22d   : > { %3919 = vst.msk [vmem:[%s6166_s22 + $0x60] sm:$0xf] %vm3894_vm8, %v4340_v44  ;;  %v4341_v29 = vpack.c.bf16 %v3739_v55, %v3739_v55  ;;  %v4896_v19 = vadd.f32 %v3604_v39, %v2090_v11  ;;  %v4860_v58 = vpop.f32.mrb[30].mxu0 }
 0x22e   : > { %3922 = vst.msk [vmem:[%s6166_s22 + $0x6c] sm:$0xf] %vm3894_vm8, %v4343_v59  ;;  %v3708_v36 = vadd.f32 %v4895_v15, %v6157_v49  ;;  %v4897_v3 = vadd.f32 %v4860_v58, %v4708_v12  ;;  %v3607_v43 = vpop.f32.mrb[31].mxu0 }
 0x22f   : > { %3920 = vst.msk [vmem:[%s6166_s22 + $0x64] sm:$0xf] %vm3894_vm8, %v4341_v29  ;;  %v3706_v8 = vadd.f32 %v4896_v19, %v6157_v49  ;;  %v4898_v33 = vadd.f32 %v3607_v43, %v2093_v54 }
 0x230   : > { %v3744_v61 = vmax.f32 %v3708_v36, 0.0  ;;  %v3709_v1 = vadd.f32 %v4897_v3, %v6157_v49 }
 0x231   : > { %v3742_v51 = vmax.f32 %v3706_v8, 0.0  ;;  %v3707_v62 = vadd.f32 %v4898_v33, %v6157_v49 }
 0x232   : > { %v4346_v34 = vpack.c.bf16 %v3744_v61, %v3744_v61  ;;  %v3745_v16 = vmax.f32 %v3709_v1, 0.0 }
 0x233   : > { %v4344_v14 = vpack.c.bf16 %v3742_v51, %v3742_v51  ;;  %v3743_v63 = vmax.f32 %v3707_v62, 0.0  ;;  %v4863_v57 = vpop.f32.mrb[32].mxu0 }
 0x234   : > { %3925 = vst.msk [vmem:[%s6166_s22 + $0x78] sm:$0xf] %vm3894_vm8, %v4346_v34  ;;  %v4347_v9 = vpack.c.bf16 %v3745_v16, %v3745_v16  ;;  %v4899_v17 = vadd.f32 %v4863_v57, %v4711_v56  ;;  %v3620_v48 = vpop.f32.mrb[33].mxu0 }
 0x235   : > { %3923 = vst.msk [vmem:[%s6166_s22 + $0x70] sm:$0xf] %vm3894_vm8, %v4344_v14  ;;  %v4345_v60 = vpack.c.bf16 %v3743_v63, %v3743_v63  ;;  %v4900_v38 = vadd.f32 %v3620_v48, %v2106_v28  ;;  %v4864_v7 = vpop.f32.mrb[34].mxu0 }
 0x236   : > { %3926 = vst.msk [vmem:[%s6166_s22 + $0x7c] sm:$0xf] %vm3894_vm8, %v4347_v9  ;;  %v3712_v4 = vadd.f32 %v4899_v17, %v6157_v49  ;;  %v4901_v11 = vadd.f32 %v4864_v7, %v4712_v13  ;;  %v3623_v24 = vpop.f32.mrb[35].mxu0 }
 0x237   : > { %3924 = vst.msk [vmem:[%s6166_s22 + $0x74] sm:$0xf] %vm3894_vm8, %v4345_v60  ;;  %v3710_v6 = vadd.f32 %v4900_v38, %v6157_v49  ;;  %v4902_v12 = vadd.f32 %v3623_v24, %v2109_v32 }
 0x238   : > { %v3748_v30 = vmax.f32 %v3712_v4, 0.0  ;;  %v3713_v42 = vadd.f32 %v4901_v11, %v6157_v49 }
 0x239   : > { %v3746_v54 = vmax.f32 %v3710_v6, 0.0  ;;  %v3711_v46 = vadd.f32 %v4902_v12, %v6157_v49 }
 0x23a   : > { %v4350_v50 = vpack.c.bf16 %v3748_v30, %v3748_v30  ;;  %v3749_v47 = vmax.f32 %v3713_v42, 0.0 }
 0x23b   : > { %v4348_v37 = vpack.c.bf16 %v3746_v54, %v3746_v54  ;;  %v3747_v18 = vmax.f32 %v3711_v46, 0.0 }
 0x23c   : > { %3929 = vst.msk [vmem:[%s6166_s22 + $0x88] sm:$0xf] %vm3894_vm8, %v4350_v50  ;;  %v4351_v52 = vpack.c.bf16 %v3749_v47, %v3749_v47 }
 0x23d   : > { %3927 = vst.msk [vmem:[%s6166_s22 + $0x80] sm:$0xf] %vm3894_vm8, %v4348_v37  ;;  %v4349_v0 = vpack.c.bf16 %v3747_v18, %v3747_v18 }
 0x23e   : > { %3930 = vst.msk [vmem:[%s6166_s22 + $0x8c] sm:$0xf] %vm3894_vm8, %v4351_v52 }
 0x23f   : > { %3928 = vst.msk [vmem:[%s6166_s22 + $0x84] sm:$0xf] %vm3894_vm8, %v4349_v0 }
 0x240 PF: > { %s13_s14 = sadd.s32 1, %s5286_s14   ;;  %s6297_s12 = smov %s5282_s13 }
 0x241   : > { %p10_p5 = scmp.ge.s32.totalorder %s13_s14, 4   ;;  %s6298_s13 = smov %s6300_s15 }
 0x243   :  { %12 = sbr.rel (!%p10_p5) target bundleno = 2 (0x2), region = 76 }

</bundles_post_ra>
